<compile_context>
chip_gen: v7x
topology: tpu7x:2x2x1
jax: 0.10.0
libtpu: 0.0.40
codegen_flags: <defaults>
</compile_context>

<pallas_src>
import jax
import jax.numpy as jnp
import numpy as np
from jax.experimental import pallas as pl
from jax.experimental.pallas import tpu as pltpu

# ----------------------------- config ---------------------------------------
VOCAB_SIZE = 16
NUM_OFFSETS = 12
NUM_DURATIONS = 10
EMBED_DIM = 32
HIDDEN = 32
BATCH = 2
SEQ = 8
LN_EPS = 1e-5
HEAD_DIM = VOCAB_SIZE + NUM_OFFSETS + NUM_DURATIONS   # 38
HEAD_PAD = 128                                        # lane-dense logits slab
W_ROWS = HEAD_PAD + 4 * HIDDEN                        # 256 packed weight rows


# --------------------- fused LSTM + LayerNorm + heads kernel -----------------
def fused_lstm_kernel(tok_ref, wbig_ref, bias_ref, out_ref):
    T, B, H = SEQ, BATCH, HIDDEN
    N = T * B

    # ---- unpack packed weight / bias slabs (static, tile-aligned slices) ----
    e2g = wbig_ref[0:HEAD_PAD, :]                         # (128,4H) emb->gates
    rhs_rec = wbig_ref[HEAD_PAD:HEAD_PAD + 3 * H, :]      # (3H,4H) [whh0;whh1;wih1]
    w_head = wbig_ref[HEAD_PAD + 3 * H:HEAD_PAD + 4 * H, :]   # (H,128)

    bias = bias_ref[...]                                  # (8,128)
    b0 = bias[0:1, :]                                     # (1,4H)
    b1 = bias[1:2, :]
    ln_g = bias[2:3, 0:H]                                 # (1,H)
    ln_b = bias[3:4, 0:H]
    b_head = bias[4:5, :]                                 # (1,128)

    # ---- in-kernel embedding lookup as a multi-hot matmul -------------------
    tokp = tok_ref[0:N, :]                                # (N,1) int32
    toko = tok_ref[N:2 * N, :]
    tokd = tok_ref[2 * N:3 * N, :]
    lane = jax.lax.broadcasted_iota(jnp.int32, (N, HEAD_PAD), 1)
    multi_hot = ((lane == tokp).astype(jnp.float32)
                 + (lane == (toko + VOCAB_SIZE)).astype(jnp.float32)
                 + (lane == (tokd + VOCAB_SIZE + NUM_OFFSETS)).astype(jnp.float32))
    # Hoisted layer-0 input projection for ALL timesteps: one MXU push.
    g0_all = jnp.dot(multi_hot, e2g,
                     preferred_element_type=jnp.float32) + b0          # (N,4H)

    zB = jnp.zeros((B, H), jnp.float32)
    zBB = jnp.zeros((B, 2 * H), jnp.float32)
    b1_rows = jnp.broadcast_to(b1, (B, 4 * H))

    def act_split(gates):
        # gate layout along lanes: [i | f | g | o]; one sigmoid + one tanh
        # pass over the full (stacked) gate block.
        sig = jax.nn.sigmoid(gates)
        th = jnp.tanh(gates)
        return sig[:, 0:H], sig[:, H:2 * H], th[:, 2 * H:3 * H], sig[:, 3 * H:4 * H]

    # ---- step 0: layer-0 cell at t=0 (h0=c0=0 -> no recurrent matmul) -------
    i, f, g, o = act_split(g0_all[0:B, :])
    c0 = i * g
    h0 = o * jnp.tanh(c0)
    h_st = jnp.concatenate([h0, zB], axis=0)              # (2B,H): [h_l0; h_l1]
    c_st = jnp.concatenate([c0, zB], axis=0)

    h1_outs = []
    # ---- wavefront steps s = 1..T-1: layer-0 time s, layer-1 time s-1 -------
    for s in range(1, T):                                 # fully unrolled
        h0 = h_st[0:B, :]
        h1 = h_st[B:2 * B, :]
        lhs = jnp.concatenate([
            jnp.concatenate([h0, zBB], axis=1),           # layer-0 row: [h0 | 0 | 0 ]
            jnp.concatenate([zB, h1, h0], axis=1),        # layer-1 row: [0 | h1 | h0]
        ], axis=0)                                        # (2B,3H)
        pre = jnp.concatenate([g0_all[s * B:(s + 1) * B, :], b1_rows], axis=0)
        gates = jnp.dot(lhs, rhs_rec,
                        preferred_element_type=jnp.float32) + pre      # (2B,4H)
        i, f, g, o = act_split(gates)                     # stacked (2B,H) slices
        c_st = f * c_st + i * g
        h_st = o * jnp.tanh(c_st)
        h1_outs.append(h_st[B:2 * B, :])                  # layer-1 output, time s-1

    # ---- final step: layer-1 cell at t=T-1 ----------------------------------
    h0 = h_st[0:B, :]
    h1 = h_st[B:2 * B, :]
    lhs = jnp.concatenate([zB, h1, h0], axis=1)           # (B,3H)
    gates = jnp.dot(lhs, rhs_rec, preferred_element_type=jnp.float32) + b1
    i, f, g, o = act_split(gates)
    c1 = f * c_st[B:2 * B, :] + i * g
    h1 = o * jnp.tanh(c1)
    h1_outs.append(h1)
    h_st = jnp.concatenate([h_st[0:B, :], h1], axis=0)    # final (2B,H) h state
    c_st = jnp.concatenate([c_st[0:B, :], c1], axis=0)    # final (2B,H) c state

    # ---- fused epilogue: LayerNorm + single lane-dense head matmul ----------
    # TODO(synk): nn.Dropout (and inter-layer LSTM dropout) are stochastic in
    # train mode; implemented as identity (eval/inference semantics).
    y = jnp.concatenate(h1_outs, axis=0)                  # (N,H), time-major
    mean = jnp.mean(y, axis=-1, keepdims=True)
    var = jnp.mean(jnp.square(y - mean), axis=-1, keepdims=True)
    yn = (y - mean) * jax.lax.rsqrt(var + LN_EPS) * ln_g + ln_b
    logits = jnp.dot(yn, w_head,
                     preferred_element_type=jnp.float32) + b_head      # (N,128)

    # state slab rows: [h layer0 (B) ; h layer1 (B) ; c layer0 (B) ; c layer1 (B)]
    states = jnp.concatenate([h_st, c_st], axis=0)        # (4B,H)
    states = jnp.concatenate(
        [states, jnp.zeros((4 * B, HEAD_PAD - H), jnp.float32)], axis=1)
    # single unmasked, lane-dense store of the whole (N+4B,128) output slab
    out_ref[...] = jnp.concatenate([logits, states], axis=0)


def run_fused(tok, p):
    N = SEQ * BATCH
    return pl.pallas_call(
        fused_lstm_kernel,
        out_shape=jax.ShapeDtypeStruct((N + 4 * BATCH, HEAD_PAD), jnp.float32),
        grid=(1,),
        in_specs=[
            pl.BlockSpec((3 * N, 1), lambda i: (0, 0)),          # tokens (int32)
            pl.BlockSpec((W_ROWS, HEAD_PAD), lambda i: (0, 0)),  # packed weights
            pl.BlockSpec((8, HEAD_PAD), lambda i: (0, 0)),       # packed biases
        ],
        out_specs=pl.BlockSpec((N + 4 * BATCH, HEAD_PAD), lambda i: (0, 0)),
        compiler_params=pltpu.CompilerParams(
            dimension_semantics=("arbitrary",)),
    )(tok, p["w_big"], p["bias_slab"])


# ------------------------------ full forward ---------------------------------
def model_forward(x_tokens, p):
    B, T, _ = x_tokens.shape
    N = T * B
    # Time-major token planes stacked row-wise into one (3N,1) int32 slab
    # (single tiny DMA; the embedding gather itself happens inside the kernel).
    tok_tm = jnp.transpose(x_tokens, (1, 0, 2)).reshape(N, 3).astype(jnp.int32)
    tok = jnp.concatenate([tok_tm[:, 0], tok_tm[:, 1], tok_tm[:, 2]],
                          axis=0).reshape(3 * N, 1)

    out = run_fused(tok, p)                               # (N + 4B, 128)

    logits = jnp.transpose(out[:N].reshape(T, B, HEAD_PAD), (1, 0, 2))
    V, O, D = VOCAB_SIZE, NUM_OFFSETS, NUM_DURATIONS
    pitch = logits[:, :, :V]
    off = logits[:, :, V:V + O]
    dur = logits[:, :, V + O:V + O + D]
    h_state = out[N:N + 2 * B, :HIDDEN].reshape(2, B, HIDDEN)
    c_state = out[N + 2 * B:N + 4 * B, :HIDDEN].reshape(2, B, HIDDEN)
    return (pitch, off, dur), (h_state, c_state)


# ------------------------------ parameters -----------------------------------
def init_params(key):
    ks = jax.random.split(key, 20)
    s = 0.1
    n = lambda k, shp: (s * jax.random.normal(k, shp)).astype(jnp.float32)
    H, E = HIDDEN, EMBED_DIM
    p = {
        "pitch_emb": n(ks[0], (VOCAB_SIZE, E)),
        "offset_emb": n(ks[1], (NUM_OFFSETS, E)),
        "dur_emb": n(ks[2], (NUM_DURATIONS, E)),
        # LSTM layer 0 (input E), layer 1 (input H). Stored pre-transposed
        # (in_dim, 4H), gate order [i|f|g|o]; bias = b_ih + b_hh.
        "wih0_t": n(ks[3], (E, 4 * H)),
        "whh0_t": n(ks[4], (H, 4 * H)),
        "b0": n(ks[5], (1, 4 * H)) + n(ks[6], (1, 4 * H)),
        "wih1_t": n(ks[7], (H, 4 * H)),
        "whh1_t": n(ks[8], (H, 4 * H)),
        "b1": n(ks[9], (1, 4 * H)) + n(ks[10], (1, 4 * H)),
        "ln_g": jnp.ones((1, H), jnp.float32),
        "ln_b": jnp.zeros((1, H), jnp.float32),
        "wp_t": n(ks[11], (H, VOCAB_SIZE)),
        "bp": n(ks[12], (1, VOCAB_SIZE)),
        "wo_t": n(ks[13], (H, NUM_OFFSETS)),
        "bo": n(ks[14], (1, NUM_OFFSETS)),
        "wd_t": n(ks[15], (H, NUM_DURATIONS)),
        "bd": n(ks[16], (1, NUM_DURATIONS)),
    }

    # ---- host-side packing (done once at init) ------------------------------
    # Fused head: concat the three heads along lanes, zero-pad to 128 lanes.
    w_head = jnp.pad(jnp.concatenate([p["wp_t"], p["wo_t"], p["wd_t"]], axis=1),
                     ((0, 0), (0, HEAD_PAD - HEAD_DIM)))             # (H,128)
    b_head = jnp.pad(jnp.concatenate([p["bp"], p["bo"], p["bd"]], axis=1),
                     ((0, 0), (0, HEAD_PAD - HEAD_DIM)))             # (1,128)
    # Combined embedding table (rows: pitch | offset | duration | zeros) folded
    # through the layer-0 input projection -> the kernel's multi-hot token
    # matrix maps straight to pre-activation gates.
    table = jnp.zeros((HEAD_PAD, E), jnp.float32)
    table = table.at[0:VOCAB_SIZE].set(p["pitch_emb"])
    table = table.at[VOCAB_SIZE:VOCAB_SIZE + NUM_OFFSETS].set(p["offset_emb"])
    table = table.at[VOCAB_SIZE + NUM_OFFSETS:HEAD_DIM].set(p["dur_emb"])
    e2g = jnp.dot(table, p["wih0_t"],
                  precision=jax.lax.Precision.HIGHEST)               # (128,4H)
    rhs_rec = jnp.concatenate([p["whh0_t"], p["whh1_t"], p["wih1_t"]], axis=0)
    p["w_big"] = jnp.concatenate([e2g, rhs_rec, w_head], axis=0)     # (256,128)

    bias_slab = jnp.zeros((8, HEAD_PAD), jnp.float32)
    bias_slab = bias_slab.at[0:1, :].set(p["b0"])
    bias_slab = bias_slab.at[1:2, :].set(p["b1"])
    bias_slab = bias_slab.at[2:3, 0:H].set(p["ln_g"])
    bias_slab = bias_slab.at[3:4, 0:H].set(p["ln_b"])
    bias_slab = bias_slab.at[4:5, :].set(b_head)
    p["bias_slab"] = bias_slab
    return p


# --------------------------- pure-JAX reference -------------------------------
def ref_forward(x_tokens, p):
    emb = (p["pitch_emb"][x_tokens[:, :, 0]]
           + p["offset_emb"][x_tokens[:, :, 1]]
           + p["dur_emb"][x_tokens[:, :, 2]])
    B, T, E = emb.shape
    H = HIDDEN

    def cell(x_t, h, c, wih_t, whh_t, b):
        gates = x_t @ wih_t + h @ whh_t + b
        i, f, g, o = jnp.split(gates, 4, axis=-1)
        i, f, o = jax.nn.sigmoid(i), jax.nn.sigmoid(f), jax.nn.sigmoid(o)
        g = jnp.tanh(g)
        c = f * c + i * g
        h = o * jnp.tanh(c)
        return h, c

    h0 = c0 = h1 = c1 = jnp.zeros((B, H), jnp.float32)
    outs = []
    for t in range(T):
        h0, c0 = cell(emb[:, t, :], h0, c0, p["wih0_t"], p["whh0_t"], p["b0"])
        h1, c1 = cell(h0, h1, c1, p["wih1_t"], p["whh1_t"], p["b1"])
        outs.append(h1)
    out = jnp.stack(outs, axis=1)                            # (B,T,H)
    mean = jnp.mean(out, axis=-1, keepdims=True)
    var = jnp.mean(jnp.square(out - mean), axis=-1, keepdims=True)
    y = (out - mean) * jax.lax.rsqrt(var + LN_EPS) * p["ln_g"][0] + p["ln_b"][0]
    logits = (y @ p["wp_t"] + p["bp"][0],
              y @ p["wo_t"] + p["bo"][0],
              y @ p["wd_t"] + p["bd"][0])
    state = (jnp.stack([h0, h1], axis=0), jnp.stack([c0, c1], axis=0))
    return logits, state


# ---------------------------------- main --------------------------------------
if __name__ == "__main__":
    key = jax.random.PRNGKey(0)
    kx1, kx2, kx3, kp = jax.random.split(key, 4)
    x_tokens = jnp.stack([
        jax.random.randint(kx1, (BATCH, SEQ), 0, VOCAB_SIZE),
        jax.random.randint(kx2, (BATCH, SEQ), 0, NUM_OFFSETS),
        jax.random.randint(kx3, (BATCH, SEQ), 0, NUM_DURATIONS),
    ], axis=-1).astype(jnp.int32)                            # (B, T, 3)

    params = init_params(kp)

    (pitch, off, dur), (h_state, c_state) = jax.block_until_ready(
        model_forward(x_tokens, params))

    (pr, orr, dr), (hr, cr) = ref_forward(x_tokens, params)
    np.testing.assert_allclose(np.asarray(pitch), np.asarray(pr), rtol=1e-3, atol=1e-3)
    np.testing.assert_allclose(np.asarray(off), np.asarray(orr), rtol=1e-3, atol=1e-3)
    np.testing.assert_allclose(np.asarray(dur), np.asarray(dr), rtol=1e-3, atol=1e-3)
    np.testing.assert_allclose(np.asarray(h_state), np.asarray(hr), rtol=1e-3, atol=1e-3)
    np.testing.assert_allclose(np.asarray(c_state), np.asarray(cr), rtol=1e-3, atol=1e-3)

    assert pitch.shape == (BATCH, SEQ, VOCAB_SIZE)
    assert off.shape == (BATCH, SEQ, NUM_OFFSETS)
    assert dur.shape == (BATCH, SEQ, NUM_DURATIONS)
    assert h_state.shape == (2, BATCH, HIDDEN) and c_state.shape == (2, BATCH, HIDDEN)

    print("KERNEL_OK")
</pallas_src>

<mosaic_0001>
module attributes {stable_mosaic.version = 11 : i64} {
  func.func @fused_lstm_kernel(%arg0: i32, %arg1: memref<48x1xi32, #tpu.memory_space<vmem>>, %arg2: memref<256x128xf32, #tpu.memory_space<vmem>>, %arg3: memref<8x128xf32, #tpu.memory_space<vmem>>, %arg4: memref<24x128xf32, #tpu.memory_space<vmem>>) attributes {dimension_semantics = [#tpu.dimension_semantics<arbitrary>], iteration_bounds = array<i64: 1>, scalar_prefetch = 0 : i64, scratch_operands = 0 : i64, tpu.core_type = #tpu.core_type<tc>, window_params = [{pipeline_mode = #tpu.pipeline_mode<synchronous>, transform_indices = @transform_0, window_bounds = array<i64: 48, 1>}, {pipeline_mode = #tpu.pipeline_mode<synchronous>, transform_indices = @transform_1, window_bounds = array<i64: 256, 128>}, {pipeline_mode = #tpu.pipeline_mode<synchronous>, transform_indices = @transform_2, window_bounds = array<i64: 8, 128>}, {pipeline_mode = #tpu.pipeline_mode<synchronous>, transform_indices = @transform_3, window_bounds = array<i64: 24, 128>}]} {
    %c0 = arith.constant 0 : index
    %c0_0 = arith.constant 0 : index
    %0 = vector.load %arg2[%c0, %c0_0] : memref<256x128xf32, #tpu.memory_space<vmem>>, vector<128x128xf32>
    %c128 = arith.constant 128 : index
    %c0_1 = arith.constant 0 : index
    %1 = vector.load %arg2[%c128, %c0_1] : memref<256x128xf32, #tpu.memory_space<vmem>>, vector<96x128xf32>
    %c224 = arith.constant 224 : index
    %c0_2 = arith.constant 0 : index
    %2 = vector.load %arg2[%c224, %c0_2] : memref<256x128xf32, #tpu.memory_space<vmem>>, vector<32x128xf32>
    %c0_3 = arith.constant 0 : index
    %c0_4 = arith.constant 0 : index
    %3 = vector.load %arg3[%c0_3, %c0_4] : memref<8x128xf32, #tpu.memory_space<vmem>>, vector<8x128xf32>
    %4 = vector.extract_strided_slice %3 {offsets = [0, 0], sizes = [1, 128], strides = [1, 1]} : vector<8x128xf32> to vector<1x128xf32>
    %5 = vector.extract_strided_slice %3 {offsets = [1, 0], sizes = [1, 128], strides = [1, 1]} : vector<8x128xf32> to vector<1x128xf32>
    %6 = vector.extract_strided_slice %3 {offsets = [2, 0], sizes = [1, 32], strides = [1, 1]} : vector<8x128xf32> to vector<1x32xf32>
    %7 = vector.extract_strided_slice %3 {offsets = [3, 0], sizes = [1, 32], strides = [1, 1]} : vector<8x128xf32> to vector<1x32xf32>
    %8 = vector.extract_strided_slice %3 {offsets = [4, 0], sizes = [1, 128], strides = [1, 1]} : vector<8x128xf32> to vector<1x128xf32>
    %c0_5 = arith.constant 0 : index
    %c0_6 = arith.constant 0 : index
    %9 = vector.load %arg1[%c0_5, %c0_6] : memref<48x1xi32, #tpu.memory_space<vmem>>, vector<16x1xi32>
    %c16 = arith.constant 16 : index
    %c0_7 = arith.constant 0 : index
    %10 = vector.load %arg1[%c16, %c0_7] : memref<48x1xi32, #tpu.memory_space<vmem>>, vector<16x1xi32>
    %c32 = arith.constant 32 : index
    %c0_8 = arith.constant 0 : index
    %11 = vector.load %arg1[%c32, %c0_8] : memref<48x1xi32, #tpu.memory_space<vmem>>, vector<16x1xi32>
    %12 = tpu.iota {dimensions = array<i32: 1>} : vector<16x128xi32>
    %13 = vector.broadcast %9 : vector<16x1xi32> to vector<16x128xi32>
    %14 = arith.cmpi eq, %12, %13 : vector<16x128xi32>
    %15 = arith.extui %14 : vector<16x128xi1> to vector<16x128xi32>
    %16 = arith.sitofp %15 : vector<16x128xi32> to vector<16x128xf32>
    %c16_i32 = arith.constant 16 : i32
    %17 = vector.broadcast %c16_i32 : i32 to vector<16x1xi32>
    %18 = arith.addi %10, %17 : vector<16x1xi32>
    %19 = vector.broadcast %18 : vector<16x1xi32> to vector<16x128xi32>
    %20 = arith.cmpi eq, %12, %19 : vector<16x128xi32>
    %21 = arith.extui %20 : vector<16x128xi1> to vector<16x128xi32>
    %22 = arith.sitofp %21 : vector<16x128xi32> to vector<16x128xf32>
    %23 = arith.addf %16, %22 : vector<16x128xf32>
    %c16_i32_9 = arith.constant 16 : i32
    %24 = vector.broadcast %c16_i32_9 : i32 to vector<16x1xi32>
    %25 = arith.addi %11, %24 : vector<16x1xi32>
    %c12_i32 = arith.constant 12 : i32
    %26 = vector.broadcast %c12_i32 : i32 to vector<16x1xi32>
    %27 = arith.addi %25, %26 : vector<16x1xi32>
    %28 = vector.broadcast %27 : vector<16x1xi32> to vector<16x128xi32>
    %29 = arith.cmpi eq, %12, %28 : vector<16x128xi32>
    %30 = arith.extui %29 : vector<16x128xi1> to vector<16x128xi32>
    %31 = arith.sitofp %30 : vector<16x128xi32> to vector<16x128xf32>
    %32 = arith.addf %23, %31 : vector<16x128xf32>
    %cst = arith.constant dense<0.000000e+00> : vector<16x128xf32>
    %33 = tpu.matmul %32, %0, %cst {dimension_numbers = #tpu.dot_dimension_numbers<[1], [0], [0], [1], [0, 0, 1, 1], [], []>} : vector<16x128xf32>, vector<128x128xf32>, vector<16x128xf32> -> vector<16x128xf32>
    %34 = vector.broadcast %4 : vector<1x128xf32> to vector<16x128xf32>
    %35 = arith.addf %33, %34 : vector<16x128xf32>
    %cst_10 = arith.constant 0.000000e+00 : f32
    %36 = vector.broadcast %cst_10 : f32 to vector<2x32xf32>
    %cst_11 = arith.constant 0.000000e+00 : f32
    %37 = vector.broadcast %cst_11 : f32 to vector<2x64xf32>
    %38 = vector.shape_cast %5 : vector<1x128xf32> to vector<1x128xf32>
    %39 = vector.broadcast %38 : vector<1x128xf32> to vector<2x128xf32>
    %40 = vector.extract_strided_slice %35 {offsets = [0, 0], sizes = [2, 128], strides = [1, 1]} : vector<16x128xf32> to vector<2x128xf32>
    %41 = arith.negf %40 : vector<2x128xf32>
    %42 = math.exp %41 : vector<2x128xf32>
    %cst_12 = arith.constant 1.000000e+00 : f32
    %43 = vector.broadcast %cst_12 : f32 to vector<2x128xf32>
    %44 = arith.addf %43, %42 : vector<2x128xf32>
    %45 = arith.divf %43, %44 : vector<2x128xf32>
    %46 = math.tanh %40 : vector<2x128xf32>
    %47 = vector.extract_strided_slice %45 {offsets = [0, 0], sizes = [2, 32], strides = [1, 1]} : vector<2x128xf32> to vector<2x32xf32>
    %48 = vector.extract_strided_slice %46 {offsets = [0, 64], sizes = [2, 32], strides = [1, 1]} : vector<2x128xf32> to vector<2x32xf32>
    %49 = vector.extract_strided_slice %45 {offsets = [0, 96], sizes = [2, 32], strides = [1, 1]} : vector<2x128xf32> to vector<2x32xf32>
    %50 = arith.mulf %47, %48 : vector<2x32xf32>
    %51 = math.tanh %50 : vector<2x32xf32>
    %52 = arith.mulf %49, %51 : vector<2x32xf32>
    %53 = tpu.concatenate %52, %36 in 0 : vector<2x32xf32>, vector<2x32xf32> -> vector<4x32xf32>
    %54 = tpu.concatenate %50, %36 in 0 : vector<2x32xf32>, vector<2x32xf32> -> vector<4x32xf32>
    %55 = vector.extract_strided_slice %53 {offsets = [0, 0], sizes = [2, 32], strides = [1, 1]} : vector<4x32xf32> to vector<2x32xf32>
    %56 = vector.extract_strided_slice %53 {offsets = [2, 0], sizes = [2, 32], strides = [1, 1]} : vector<4x32xf32> to vector<2x32xf32>
    %57 = tpu.concatenate %55, %37 in 1 : vector<2x32xf32>, vector<2x64xf32> -> vector<2x96xf32>
    %58 = tpu.concatenate %36, %56, %55 in 1 : vector<2x32xf32>, vector<2x32xf32>, vector<2x32xf32> -> vector<2x96xf32>
    %59 = tpu.concatenate %57, %58 in 0 : vector<2x96xf32>, vector<2x96xf32> -> vector<4x96xf32>
    %60 = vector.extract_strided_slice %35 {offsets = [2, 0], sizes = [2, 128], strides = [1, 1]} : vector<16x128xf32> to vector<2x128xf32>
    %61 = tpu.concatenate %60, %39 in 0 : vector<2x128xf32>, vector<2x128xf32> -> vector<4x128xf32>
    %cst_13 = arith.constant dense<0.000000e+00> : vector<4x128xf32>
    %62 = tpu.matmul %59, %1, %cst_13 {dimension_numbers = #tpu.dot_dimension_numbers<[1], [0], [0], [1], [0, 0, 1, 1], [], []>} : vector<4x96xf32>, vector<96x128xf32>, vector<4x128xf32> -> vector<4x128xf32>
    %63 = arith.addf %62, %61 : vector<4x128xf32>
    %64 = arith.negf %63 : vector<4x128xf32>
    %65 = math.exp %64 : vector<4x128xf32>
    %cst_14 = arith.constant 1.000000e+00 : f32
    %66 = vector.broadcast %cst_14 : f32 to vector<4x128xf32>
    %67 = arith.addf %66, %65 : vector<4x128xf32>
    %68 = arith.divf %66, %67 : vector<4x128xf32>
    %69 = math.tanh %63 : vector<4x128xf32>
    %70 = vector.extract_strided_slice %68 {offsets = [0, 0], sizes = [4, 32], strides = [1, 1]} : vector<4x128xf32> to vector<4x32xf32>
    %71 = vector.extract_strided_slice %68 {offsets = [0, 32], sizes = [4, 32], strides = [1, 1]} : vector<4x128xf32> to vector<4x32xf32>
    %72 = vector.extract_strided_slice %69 {offsets = [0, 64], sizes = [4, 32], strides = [1, 1]} : vector<4x128xf32> to vector<4x32xf32>
    %73 = vector.extract_strided_slice %68 {offsets = [0, 96], sizes = [4, 32], strides = [1, 1]} : vector<4x128xf32> to vector<4x32xf32>
    %74 = arith.mulf %71, %54 : vector<4x32xf32>
    %75 = arith.mulf %70, %72 : vector<4x32xf32>
    %76 = arith.addf %74, %75 : vector<4x32xf32>
    %77 = math.tanh %76 : vector<4x32xf32>
    %78 = arith.mulf %73, %77 : vector<4x32xf32>
    %79 = vector.extract_strided_slice %78 {offsets = [2, 0], sizes = [2, 32], strides = [1, 1]} : vector<4x32xf32> to vector<2x32xf32>
    %80 = vector.extract_strided_slice %78 {offsets = [0, 0], sizes = [2, 32], strides = [1, 1]} : vector<4x32xf32> to vector<2x32xf32>
    %81 = vector.extract_strided_slice %78 {offsets = [2, 0], sizes = [2, 32], strides = [1, 1]} : vector<4x32xf32> to vector<2x32xf32>
    %82 = tpu.concatenate %80, %37 in 1 : vector<2x32xf32>, vector<2x64xf32> -> vector<2x96xf32>
    %83 = tpu.concatenate %36, %81, %80 in 1 : vector<2x32xf32>, vector<2x32xf32>, vector<2x32xf32> -> vector<2x96xf32>
    %84 = tpu.concatenate %82, %83 in 0 : vector<2x96xf32>, vector<2x96xf32> -> vector<4x96xf32>
    %85 = vector.extract_strided_slice %35 {offsets = [4, 0], sizes = [2, 128], strides = [1, 1]} : vector<16x128xf32> to vector<2x128xf32>
    %86 = tpu.concatenate %85, %39 in 0 : vector<2x128xf32>, vector<2x128xf32> -> vector<4x128xf32>
    %cst_15 = arith.constant dense<0.000000e+00> : vector<4x128xf32>
    %87 = tpu.matmul %84, %1, %cst_15 {dimension_numbers = #tpu.dot_dimension_numbers<[1], [0], [0], [1], [0, 0, 1, 1], [], []>} : vector<4x96xf32>, vector<96x128xf32>, vector<4x128xf32> -> vector<4x128xf32>
    %88 = arith.addf %87, %86 : vector<4x128xf32>
    %89 = arith.negf %88 : vector<4x128xf32>
    %90 = math.exp %89 : vector<4x128xf32>
    %cst_16 = arith.constant 1.000000e+00 : f32
    %91 = vector.broadcast %cst_16 : f32 to vector<4x128xf32>
    %92 = arith.addf %91, %90 : vector<4x128xf32>
    %93 = arith.divf %91, %92 : vector<4x128xf32>
    %94 = math.tanh %88 : vector<4x128xf32>
    %95 = vector.extract_strided_slice %93 {offsets = [0, 0], sizes = [4, 32], strides = [1, 1]} : vector<4x128xf32> to vector<4x32xf32>
    %96 = vector.extract_strided_slice %93 {offsets = [0, 32], sizes = [4, 32], strides = [1, 1]} : vector<4x128xf32> to vector<4x32xf32>
    %97 = vector.extract_strided_slice %94 {offsets = [0, 64], sizes = [4, 32], strides = [1, 1]} : vector<4x128xf32> to vector<4x32xf32>
    %98 = vector.extract_strided_slice %93 {offsets = [0, 96], sizes = [4, 32], strides = [1, 1]} : vector<4x128xf32> to vector<4x32xf32>
    %99 = arith.mulf %96, %76 : vector<4x32xf32>
    %100 = arith.mulf %95, %97 : vector<4x32xf32>
    %101 = arith.addf %99, %100 : vector<4x32xf32>
    %102 = math.tanh %101 : vector<4x32xf32>
    %103 = arith.mulf %98, %102 : vector<4x32xf32>
    %104 = vector.extract_strided_slice %103 {offsets = [2, 0], sizes = [2, 32], strides = [1, 1]} : vector<4x32xf32> to vector<2x32xf32>
    %105 = vector.extract_strided_slice %103 {offsets = [0, 0], sizes = [2, 32], strides = [1, 1]} : vector<4x32xf32> to vector<2x32xf32>
    %106 = vector.extract_strided_slice %103 {offsets = [2, 0], sizes = [2, 32], strides = [1, 1]} : vector<4x32xf32> to vector<2x32xf32>
    %107 = tpu.concatenate %105, %37 in 1 : vector<2x32xf32>, vector<2x64xf32> -> vector<2x96xf32>
    %108 = tpu.concatenate %36, %106, %105 in 1 : vector<2x32xf32>, vector<2x32xf32>, vector<2x32xf32> -> vector<2x96xf32>
    %109 = tpu.concatenate %107, %108 in 0 : vector<2x96xf32>, vector<2x96xf32> -> vector<4x96xf32>
    %110 = vector.extract_strided_slice %35 {offsets = [6, 0], sizes = [2, 128], strides = [1, 1]} : vector<16x128xf32> to vector<2x128xf32>
    %111 = tpu.concatenate %110, %39 in 0 : vector<2x128xf32>, vector<2x128xf32> -> vector<4x128xf32>
    %cst_17 = arith.constant dense<0.000000e+00> : vector<4x128xf32>
    %112 = tpu.matmul %109, %1, %cst_17 {dimension_numbers = #tpu.dot_dimension_numbers<[1], [0], [0], [1], [0, 0, 1, 1], [], []>} : vector<4x96xf32>, vector<96x128xf32>, vector<4x128xf32> -> vector<4x128xf32>
    %113 = arith.addf %112, %111 : vector<4x128xf32>
    %114 = arith.negf %113 : vector<4x128xf32>
    %115 = math.exp %114 : vector<4x128xf32>
    %cst_18 = arith.constant 1.000000e+00 : f32
    %116 = vector.broadcast %cst_18 : f32 to vector<4x128xf32>
    %117 = arith.addf %116, %115 : vector<4x128xf32>
    %118 = arith.divf %116, %117 : vector<4x128xf32>
    %119 = math.tanh %113 : vector<4x128xf32>
    %120 = vector.extract_strided_slice %118 {offsets = [0, 0], sizes = [4, 32], strides = [1, 1]} : vector<4x128xf32> to vector<4x32xf32>
    %121 = vector.extract_strided_slice %118 {offsets = [0, 32], sizes = [4, 32], strides = [1, 1]} : vector<4x128xf32> to vector<4x32xf32>
    %122 = vector.extract_strided_slice %119 {offsets = [0, 64], sizes = [4, 32], strides = [1, 1]} : vector<4x128xf32> to vector<4x32xf32>
    %123 = vector.extract_strided_slice %118 {offsets = [0, 96], sizes = [4, 32], strides = [1, 1]} : vector<4x128xf32> to vector<4x32xf32>
    %124 = arith.mulf %121, %101 : vector<4x32xf32>
    %125 = arith.mulf %120, %122 : vector<4x32xf32>
    %126 = arith.addf %124, %125 : vector<4x32xf32>
    %127 = math.tanh %126 : vector<4x32xf32>
    %128 = arith.mulf %123, %127 : vector<4x32xf32>
    %129 = vector.extract_strided_slice %128 {offsets = [2, 0], sizes = [2, 32], strides = [1, 1]} : vector<4x32xf32> to vector<2x32xf32>
    %130 = vector.extract_strided_slice %128 {offsets = [0, 0], sizes = [2, 32], strides = [1, 1]} : vector<4x32xf32> to vector<2x32xf32>
    %131 = vector.extract_strided_slice %128 {offsets = [2, 0], sizes = [2, 32], strides = [1, 1]} : vector<4x32xf32> to vector<2x32xf32>
    %132 = tpu.concatenate %130, %37 in 1 : vector<2x32xf32>, vector<2x64xf32> -> vector<2x96xf32>
    %133 = tpu.concatenate %36, %131, %130 in 1 : vector<2x32xf32>, vector<2x32xf32>, vector<2x32xf32> -> vector<2x96xf32>
    %134 = tpu.concatenate %132, %133 in 0 : vector<2x96xf32>, vector<2x96xf32> -> vector<4x96xf32>
    %135 = vector.extract_strided_slice %35 {offsets = [8, 0], sizes = [2, 128], strides = [1, 1]} : vector<16x128xf32> to vector<2x128xf32>
    %136 = tpu.concatenate %135, %39 in 0 : vector<2x128xf32>, vector<2x128xf32> -> vector<4x128xf32>
    %cst_19 = arith.constant dense<0.000000e+00> : vector<4x128xf32>
    %137 = tpu.matmul %134, %1, %cst_19 {dimension_numbers = #tpu.dot_dimension_numbers<[1], [0], [0], [1], [0, 0, 1, 1], [], []>} : vector<4x96xf32>, vector<96x128xf32>, vector<4x128xf32> -> vector<4x128xf32>
    %138 = arith.addf %137, %136 : vector<4x128xf32>
    %139 = arith.negf %138 : vector<4x128xf32>
    %140 = math.exp %139 : vector<4x128xf32>
    %cst_20 = arith.constant 1.000000e+00 : f32
    %141 = vector.broadcast %cst_20 : f32 to vector<4x128xf32>
    %142 = arith.addf %141, %140 : vector<4x128xf32>
    %143 = arith.divf %141, %142 : vector<4x128xf32>
    %144 = math.tanh %138 : vector<4x128xf32>
    %145 = vector.extract_strided_slice %143 {offsets = [0, 0], sizes = [4, 32], strides = [1, 1]} : vector<4x128xf32> to vector<4x32xf32>
    %146 = vector.extract_strided_slice %143 {offsets = [0, 32], sizes = [4, 32], strides = [1, 1]} : vector<4x128xf32> to vector<4x32xf32>
    %147 = vector.extract_strided_slice %144 {offsets = [0, 64], sizes = [4, 32], strides = [1, 1]} : vector<4x128xf32> to vector<4x32xf32>
    %148 = vector.extract_strided_slice %143 {offsets = [0, 96], sizes = [4, 32], strides = [1, 1]} : vector<4x128xf32> to vector<4x32xf32>
    %149 = arith.mulf %146, %126 : vector<4x32xf32>
    %150 = arith.mulf %145, %147 : vector<4x32xf32>
    %151 = arith.addf %149, %150 : vector<4x32xf32>
    %152 = math.tanh %151 : vector<4x32xf32>
    %153 = arith.mulf %148, %152 : vector<4x32xf32>
    %154 = vector.extract_strided_slice %153 {offsets = [2, 0], sizes = [2, 32], strides = [1, 1]} : vector<4x32xf32> to vector<2x32xf32>
    %155 = vector.extract_strided_slice %153 {offsets = [0, 0], sizes = [2, 32], strides = [1, 1]} : vector<4x32xf32> to vector<2x32xf32>
    %156 = vector.extract_strided_slice %153 {offsets = [2, 0], sizes = [2, 32], strides = [1, 1]} : vector<4x32xf32> to vector<2x32xf32>
    %157 = tpu.concatenate %155, %37 in 1 : vector<2x32xf32>, vector<2x64xf32> -> vector<2x96xf32>
    %158 = tpu.concatenate %36, %156, %155 in 1 : vector<2x32xf32>, vector<2x32xf32>, vector<2x32xf32> -> vector<2x96xf32>
    %159 = tpu.concatenate %157, %158 in 0 : vector<2x96xf32>, vector<2x96xf32> -> vector<4x96xf32>
    %160 = vector.extract_strided_slice %35 {offsets = [10, 0], sizes = [2, 128], strides = [1, 1]} : vector<16x128xf32> to vector<2x128xf32>
    %161 = tpu.concatenate %160, %39 in 0 : vector<2x128xf32>, vector<2x128xf32> -> vector<4x128xf32>
    %cst_21 = arith.constant dense<0.000000e+00> : vector<4x128xf32>
    %162 = tpu.matmul %159, %1, %cst_21 {dimension_numbers = #tpu.dot_dimension_numbers<[1], [0], [0], [1], [0, 0, 1, 1], [], []>} : vector<4x96xf32>, vector<96x128xf32>, vector<4x128xf32> -> vector<4x128xf32>
    %163 = arith.addf %162, %161 : vector<4x128xf32>
    %164 = arith.negf %163 : vector<4x128xf32>
    %165 = math.exp %164 : vector<4x128xf32>
    %cst_22 = arith.constant 1.000000e+00 : f32
    %166 = vector.broadcast %cst_22 : f32 to vector<4x128xf32>
    %167 = arith.addf %166, %165 : vector<4x128xf32>
    %168 = arith.divf %166, %167 : vector<4x128xf32>
    %169 = math.tanh %163 : vector<4x128xf32>
    %170 = vector.extract_strided_slice %168 {offsets = [0, 0], sizes = [4, 32], strides = [1, 1]} : vector<4x128xf32> to vector<4x32xf32>
    %171 = vector.extract_strided_slice %168 {offsets = [0, 32], sizes = [4, 32], strides = [1, 1]} : vector<4x128xf32> to vector<4x32xf32>
    %172 = vector.extract_strided_slice %169 {offsets = [0, 64], sizes = [4, 32], strides = [1, 1]} : vector<4x128xf32> to vector<4x32xf32>
    %173 = vector.extract_strided_slice %168 {offsets = [0, 96], sizes = [4, 32], strides = [1, 1]} : vector<4x128xf32> to vector<4x32xf32>
    %174 = arith.mulf %171, %151 : vector<4x32xf32>
    %175 = arith.mulf %170, %172 : vector<4x32xf32>
    %176 = arith.addf %174, %175 : vector<4x32xf32>
    %177 = math.tanh %176 : vector<4x32xf32>
    %178 = arith.mulf %173, %177 : vector<4x32xf32>
    %179 = vector.extract_strided_slice %178 {offsets = [2, 0], sizes = [2, 32], strides = [1, 1]} : vector<4x32xf32> to vector<2x32xf32>
    %180 = vector.extract_strided_slice %178 {offsets = [0, 0], sizes = [2, 32], strides = [1, 1]} : vector<4x32xf32> to vector<2x32xf32>
    %181 = vector.extract_strided_slice %178 {offsets = [2, 0], sizes = [2, 32], strides = [1, 1]} : vector<4x32xf32> to vector<2x32xf32>
    %182 = tpu.concatenate %180, %37 in 1 : vector<2x32xf32>, vector<2x64xf32> -> vector<2x96xf32>
    %183 = tpu.concatenate %36, %181, %180 in 1 : vector<2x32xf32>, vector<2x32xf32>, vector<2x32xf32> -> vector<2x96xf32>
    %184 = tpu.concatenate %182, %183 in 0 : vector<2x96xf32>, vector<2x96xf32> -> vector<4x96xf32>
    %185 = vector.extract_strided_slice %35 {offsets = [12, 0], sizes = [2, 128], strides = [1, 1]} : vector<16x128xf32> to vector<2x128xf32>
    %186 = tpu.concatenate %185, %39 in 0 : vector<2x128xf32>, vector<2x128xf32> -> vector<4x128xf32>
    %cst_23 = arith.constant dense<0.000000e+00> : vector<4x128xf32>
    %187 = tpu.matmul %184, %1, %cst_23 {dimension_numbers = #tpu.dot_dimension_numbers<[1], [0], [0], [1], [0, 0, 1, 1], [], []>} : vector<4x96xf32>, vector<96x128xf32>, vector<4x128xf32> -> vector<4x128xf32>
    %188 = arith.addf %187, %186 : vector<4x128xf32>
    %189 = arith.negf %188 : vector<4x128xf32>
    %190 = math.exp %189 : vector<4x128xf32>
    %cst_24 = arith.constant 1.000000e+00 : f32
    %191 = vector.broadcast %cst_24 : f32 to vector<4x128xf32>
    %192 = arith.addf %191, %190 : vector<4x128xf32>
    %193 = arith.divf %191, %192 : vector<4x128xf32>
    %194 = math.tanh %188 : vector<4x128xf32>
    %195 = vector.extract_strided_slice %193 {offsets = [0, 0], sizes = [4, 32], strides = [1, 1]} : vector<4x128xf32> to vector<4x32xf32>
    %196 = vector.extract_strided_slice %193 {offsets = [0, 32], sizes = [4, 32], strides = [1, 1]} : vector<4x128xf32> to vector<4x32xf32>
    %197 = vector.extract_strided_slice %194 {offsets = [0, 64], sizes = [4, 32], strides = [1, 1]} : vector<4x128xf32> to vector<4x32xf32>
    %198 = vector.extract_strided_slice %193 {offsets = [0, 96], sizes = [4, 32], strides = [1, 1]} : vector<4x128xf32> to vector<4x32xf32>
    %199 = arith.mulf %196, %176 : vector<4x32xf32>
    %200 = arith.mulf %195, %197 : vector<4x32xf32>
    %201 = arith.addf %199, %200 : vector<4x32xf32>
    %202 = math.tanh %201 : vector<4x32xf32>
    %203 = arith.mulf %198, %202 : vector<4x32xf32>
    %204 = vector.extract_strided_slice %203 {offsets = [2, 0], sizes = [2, 32], strides = [1, 1]} : vector<4x32xf32> to vector<2x32xf32>
    %205 = vector.extract_strided_slice %203 {offsets = [0, 0], sizes = [2, 32], strides = [1, 1]} : vector<4x32xf32> to vector<2x32xf32>
    %206 = vector.extract_strided_slice %203 {offsets = [2, 0], sizes = [2, 32], strides = [1, 1]} : vector<4x32xf32> to vector<2x32xf32>
    %207 = tpu.concatenate %205, %37 in 1 : vector<2x32xf32>, vector<2x64xf32> -> vector<2x96xf32>
    %208 = tpu.concatenate %36, %206, %205 in 1 : vector<2x32xf32>, vector<2x32xf32>, vector<2x32xf32> -> vector<2x96xf32>
    %209 = tpu.concatenate %207, %208 in 0 : vector<2x96xf32>, vector<2x96xf32> -> vector<4x96xf32>
    %210 = vector.extract_strided_slice %35 {offsets = [14, 0], sizes = [2, 128], strides = [1, 1]} : vector<16x128xf32> to vector<2x128xf32>
    %211 = tpu.concatenate %210, %39 in 0 : vector<2x128xf32>, vector<2x128xf32> -> vector<4x128xf32>
    %cst_25 = arith.constant dense<0.000000e+00> : vector<4x128xf32>
    %212 = tpu.matmul %209, %1, %cst_25 {dimension_numbers = #tpu.dot_dimension_numbers<[1], [0], [0], [1], [0, 0, 1, 1], [], []>} : vector<4x96xf32>, vector<96x128xf32>, vector<4x128xf32> -> vector<4x128xf32>
    %213 = arith.addf %212, %211 : vector<4x128xf32>
    %214 = arith.negf %213 : vector<4x128xf32>
    %215 = math.exp %214 : vector<4x128xf32>
    %cst_26 = arith.constant 1.000000e+00 : f32
    %216 = vector.broadcast %cst_26 : f32 to vector<4x128xf32>
    %217 = arith.addf %216, %215 : vector<4x128xf32>
    %218 = arith.divf %216, %217 : vector<4x128xf32>
    %219 = math.tanh %213 : vector<4x128xf32>
    %220 = vector.extract_strided_slice %218 {offsets = [0, 0], sizes = [4, 32], strides = [1, 1]} : vector<4x128xf32> to vector<4x32xf32>
    %221 = vector.extract_strided_slice %218 {offsets = [0, 32], sizes = [4, 32], strides = [1, 1]} : vector<4x128xf32> to vector<4x32xf32>
    %222 = vector.extract_strided_slice %219 {offsets = [0, 64], sizes = [4, 32], strides = [1, 1]} : vector<4x128xf32> to vector<4x32xf32>
    %223 = vector.extract_strided_slice %218 {offsets = [0, 96], sizes = [4, 32], strides = [1, 1]} : vector<4x128xf32> to vector<4x32xf32>
    %224 = arith.mulf %221, %201 : vector<4x32xf32>
    %225 = arith.mulf %220, %222 : vector<4x32xf32>
    %226 = arith.addf %224, %225 : vector<4x32xf32>
    %227 = math.tanh %226 : vector<4x32xf32>
    %228 = arith.mulf %223, %227 : vector<4x32xf32>
    %229 = vector.extract_strided_slice %228 {offsets = [2, 0], sizes = [2, 32], strides = [1, 1]} : vector<4x32xf32> to vector<2x32xf32>
    %230 = vector.extract_strided_slice %228 {offsets = [0, 0], sizes = [2, 32], strides = [1, 1]} : vector<4x32xf32> to vector<2x32xf32>
    %231 = vector.extract_strided_slice %228 {offsets = [2, 0], sizes = [2, 32], strides = [1, 1]} : vector<4x32xf32> to vector<2x32xf32>
    %232 = tpu.concatenate %36, %231, %230 in 1 : vector<2x32xf32>, vector<2x32xf32>, vector<2x32xf32> -> vector<2x96xf32>
    %cst_27 = arith.constant dense<0.000000e+00> : vector<2x128xf32>
    %233 = tpu.matmul %232, %1, %cst_27 {dimension_numbers = #tpu.dot_dimension_numbers<[1], [0], [0], [1], [0, 0, 1, 1], [], []>} : vector<2x96xf32>, vector<96x128xf32>, vector<2x128xf32> -> vector<2x128xf32>
    %234 = vector.broadcast %5 : vector<1x128xf32> to vector<2x128xf32>
    %235 = arith.addf %233, %234 : vector<2x128xf32>
    %236 = arith.negf %235 : vector<2x128xf32>
    %237 = math.exp %236 : vector<2x128xf32>
    %cst_28 = arith.constant 1.000000e+00 : f32
    %238 = vector.broadcast %cst_28 : f32 to vector<2x128xf32>
    %239 = arith.addf %238, %237 : vector<2x128xf32>
    %240 = arith.divf %238, %239 : vector<2x128xf32>
    %241 = math.tanh %235 : vector<2x128xf32>
    %242 = vector.extract_strided_slice %240 {offsets = [0, 0], sizes = [2, 32], strides = [1, 1]} : vector<2x128xf32> to vector<2x32xf32>
    %243 = vector.extract_strided_slice %240 {offsets = [0, 32], sizes = [2, 32], strides = [1, 1]} : vector<2x128xf32> to vector<2x32xf32>
    %244 = vector.extract_strided_slice %241 {offsets = [0, 64], sizes = [2, 32], strides = [1, 1]} : vector<2x128xf32> to vector<2x32xf32>
    %245 = vector.extract_strided_slice %240 {offsets = [0, 96], sizes = [2, 32], strides = [1, 1]} : vector<2x128xf32> to vector<2x32xf32>
    %246 = vector.extract_strided_slice %226 {offsets = [2, 0], sizes = [2, 32], strides = [1, 1]} : vector<4x32xf32> to vector<2x32xf32>
    %247 = arith.mulf %243, %246 : vector<2x32xf32>
    %248 = arith.mulf %242, %244 : vector<2x32xf32>
    %249 = arith.addf %247, %248 : vector<2x32xf32>
    %250 = math.tanh %249 : vector<2x32xf32>
    %251 = arith.mulf %245, %250 : vector<2x32xf32>
    %252 = vector.extract_strided_slice %228 {offsets = [0, 0], sizes = [2, 32], strides = [1, 1]} : vector<4x32xf32> to vector<2x32xf32>
    %253 = tpu.concatenate %252, %251 in 0 : vector<2x32xf32>, vector<2x32xf32> -> vector<4x32xf32>
    %254 = vector.extract_strided_slice %226 {offsets = [0, 0], sizes = [2, 32], strides = [1, 1]} : vector<4x32xf32> to vector<2x32xf32>
    %255 = tpu.concatenate %254, %249 in 0 : vector<2x32xf32>, vector<2x32xf32> -> vector<4x32xf32>
    %256 = tpu.concatenate %79, %104, %129, %154, %179, %204, %229, %251 in 0 : vector<2x32xf32>, vector<2x32xf32>, vector<2x32xf32>, vector<2x32xf32>, vector<2x32xf32>, vector<2x32xf32>, vector<2x32xf32>, vector<2x32xf32> -> vector<16x32xf32>
    %cst_29 = arith.constant dense<0.000000e+00> : vector<16xf32>
    %257 = vector.multi_reduction <add>, %256, %cst_29 [1] : vector<16x32xf32> to vector<16xf32>
    %258 = vector.shape_cast %257 : vector<16xf32> to vector<16x1xf32>
    %cst_30 = arith.constant 3.200000e+01 : f32
    %259 = vector.broadcast %cst_30 : f32 to vector<16x1xf32>
    %260 = arith.divf %258, %259 : vector<16x1xf32>
    %261 = vector.broadcast %260 : vector<16x1xf32> to vector<16x32xf32>
    %262 = arith.subf %256, %261 : vector<16x32xf32>
    %263 = arith.mulf %262, %262 : vector<16x32xf32>
    %cst_31 = arith.constant dense<0.000000e+00> : vector<16xf32>
    %264 = vector.multi_reduction <add>, %263, %cst_31 [1] : vector<16x32xf32> to vector<16xf32>
    %265 = vector.shape_cast %264 : vector<16xf32> to vector<16x1xf32>
    %cst_32 = arith.constant 3.200000e+01 : f32
    %266 = vector.broadcast %cst_32 : f32 to vector<16x1xf32>
    %267 = arith.divf %265, %266 : vector<16x1xf32>
    %268 = vector.broadcast %260 : vector<16x1xf32> to vector<16x32xf32>
    %269 = arith.subf %256, %268 : vector<16x32xf32>
    %cst_33 = arith.constant 9.99999974E-6 : f32
    %270 = vector.broadcast %cst_33 : f32 to vector<16x1xf32>
    %271 = arith.addf %267, %270 : vector<16x1xf32>
    %272 = math.rsqrt %271 : vector<16x1xf32>
    %273 = vector.broadcast %272 : vector<16x1xf32> to vector<16x32xf32>
    %274 = arith.mulf %269, %273 : vector<16x32xf32>
    %275 = vector.broadcast %6 : vector<1x32xf32> to vector<16x32xf32>
    %276 = arith.mulf %274, %275 : vector<16x32xf32>
    %277 = vector.broadcast %7 : vector<1x32xf32> to vector<16x32xf32>
    %278 = arith.addf %276, %277 : vector<16x32xf32>
    %cst_34 = arith.constant dense<0.000000e+00> : vector<16x128xf32>
    %279 = tpu.matmul %278, %2, %cst_34 {dimension_numbers = #tpu.dot_dimension_numbers<[1], [0], [0], [1], [0, 0, 1, 1], [], []>} : vector<16x32xf32>, vector<32x128xf32>, vector<16x128xf32> -> vector<16x128xf32>
    %280 = vector.broadcast %8 : vector<1x128xf32> to vector<16x128xf32>
    %281 = arith.addf %279, %280 : vector<16x128xf32>
    %282 = tpu.concatenate %253, %255 in 0 : vector<4x32xf32>, vector<4x32xf32> -> vector<8x32xf32>
    %cst_35 = arith.constant 0.000000e+00 : f32
    %283 = vector.broadcast %cst_35 : f32 to vector<8x96xf32>
    %284 = tpu.concatenate %282, %283 in 1 : vector<8x32xf32>, vector<8x96xf32> -> vector<8x128xf32>
    %285 = tpu.concatenate %281, %284 in 0 : vector<16x128xf32>, vector<8x128xf32> -> vector<24x128xf32>
    %c0_36 = arith.constant 0 : index
    %c0_37 = arith.constant 0 : index
    %286 = vector.load %arg4[%c0_36, %c0_37] : memref<24x128xf32, #tpu.memory_space<vmem>>, vector<24x128xf32>
    tpu.vector_store %arg4[%c0_36, %c0_37], %285 {strides = array<i32>} : memref<24x128xf32, #tpu.memory_space<vmem>>, vector<24x128xf32>,
    return
  }
  func.func @transform_0(%arg0: i32) -> (i32, i32) {
    %c0_i32 = arith.constant 0 : i32
    %c0_i32_0 = arith.constant 0 : i32
    %c0_i32_1 = arith.constant 0 : i32
    return %c0_i32, %c0_i32_0 : i32, i32
  }
  func.func @transform_1(%arg0: i32) -> (i32, i32) {
    %c0_i32 = arith.constant 0 : i32
    %c0_i32_0 = arith.constant 0 : i32
    %c0_i32_1 = arith.constant 0 : i32
    return %c0_i32, %c0_i32_0 : i32, i32
  }
  func.func @transform_2(%arg0: i32) -> (i32, i32) {
    %c0_i32 = arith.constant 0 : i32
    %c0_i32_0 = arith.constant 0 : i32
    %c0_i32_1 = arith.constant 0 : i32
    return %c0_i32, %c0_i32_0 : i32, i32
  }
  func.func @transform_3(%arg0: i32) -> (i32, i32) {
    %c0_i32 = arith.constant 0 : i32
    %c0_i32_0 = arith.constant 0 : i32
    %c0_i32_1 = arith.constant 0 : i32
    return %c0_i32, %c0_i32_0 : i32, i32
  }
}

</mosaic_0001>

<bundles_post_ra>
// kernel: tpu_custom_call.1
= control target key start
LH: loop header
LB: loop body
LE: loop exit
PB: predicated region body
PF: predicated region fallthrough
CT: control target
= control target key end

     0   :  { %8 = vsyncpa [#allocation3], 0  ;;  %s2530_s0 = inlined_call_operand.vmem [shape: s32[48,1], index: 0, kind: input, shape index: {}]   ;;  %s2531_s1 = inlined_call_operand.hbm [shape: f32[256,128], index: 1, kind: input, shape index: {}]   ;;  %s2532_s2 = inlined_call_operand.vmem [shape: f32[8,128], index: 2, kind: input, shape index: {}]   ;;  %s2533_s3 = inlined_call_operand.hbm [shape: f32[24,128], index: 3, kind: output, shape index: {}]  }
   0x1   :  { %9 = vsyncpa [#allocation4], 0  ;;  %s2109_s12 = smov [#allocation2]   ;;  %s2061_s16 = scalar_lea.hbm %s2531_s1, 4096 }
   0x2   :  { %s17_s13 = sshll.u32 %s2109_s12, 4  ;;  %p2062_p0 = scmp.ne.s32.totalorder %s2531_s1, %s2061_s16  ;;  %s18_s13 = int_to_ptr.vmem [resolvable:$true] %s17_s13 }
   0x3   :  { %p2065_p1 = scmp.lt.u32.totalorder %s2061_s16, %s2531_s1 }
   0x5   :  { %p2067_p2 = pnand %p2065_p1, %p2062_p0 }
   0x7   :  { %2070 = shalt.err (!%p2067_p2)
}
   0x8   :  { %s2071_s21 = scalar_lea.vmem %s18_s13, 4096  ;;  %p2076_p4 = scmp.lt.s32.totalorder %s18_s13, %s18_s13 }
   0x9   :  { %p2072_p3 = scmp.ne.s32.totalorder %s18_s13, %s2071_s21  ;;  %p2077_p5 = scmp.lt.s32.totalorder %s2071_s21, %s2071_s21 }
   0xb   :  { %p2078_p6 = por %p2077_p5, %p2076_p4 }
   0xd   :  { %p2079_p7 = pnand %p2078_p6, %p2072_p3 }
   0xf   :  { %2082 = shalt.err (!%p2079_p7)
}
  0x10   :  { %s2110_s22 = smov 128   ;;  %s2111_s23 = smov 8  }
  0x11   :  { %23 = dma.hbm_to_vmem [thread:$0]  %s2531_s1, 4096, %s18_s13, [#allocation3], %s2110_s22, %s2110_s22, %s2111_s23  }
  0x12   :  { %2105 = dma.done.wait [#allocation3], 4096  }
  0x13   :  { %2106 = vsyncadd [#allocation3], 4294963200  ;;  %v2112_v0 = vmov 0   ;;  %v63_v1 = vld [vmem:[%s2530_s0 + $0x8] sm:$0xff]  ;;  %v62_v2 = vld [vmem:[%s2530_s0] sm:$0xff]  ;;  %v68_v37 = vlaneseq  ;;  %v2113_v43 = vmov 0.0  }
  0x14   :  { %1983 = vset.pattern.permute.xlu1 %v2112_v0  ;;  %1982 = vset.pattern.permute.xlu0 %v2112_v0  ;;  %v65_v3 = vld [vmem:[%s2530_s0 + $0x18] sm:$0xff]  ;;  %v64_v5 = vld [vmem:[%s2530_s0 + $0x10] sm:$0xff]  ;;  %v67_v6 = vld [vmem:[%s2530_s0 + $0x28] sm:$0xff]  ;;  %s2114_s11 = smov 64   ;;  %s2115_s12 = smov 96   ;;  %vm2117_vm6 = vmmov 0  }
  0x15   :  { %74 = vperm.xlu1 %1983, %v63_v1   ;;  %71 = vperm.xlu0 %1982, %v62_v2   ;;  %v83_v4 = vadd.s32 16, %v65_v3  ;;  %v66_v7 = vld [vmem:[%s2530_s0 + $0x20] sm:$0xff]  ;;  %v82_v8 = vadd.s32 16, %v64_v5  ;;  %v99_v9 = vadd.s32 16, %v67_v6  ;;  %v29_v11 = vld [vmem:[#allocation2] sm:$0xff]  ;;  %v31_v13 = vld [vmem:[#allocation2 + $0x10] sm:$0xff] }
  0x16   :  { %v98_v10 = vadd.s32 16, %v66_v7  ;;  %v30_v12 = vld [vmem:[#allocation2 + $0x8] sm:$0xff]  ;;  %v32_v15 = vld [vmem:[#allocation2 + $0x18] sm:$0xff]  ;;  %v33_v19 = vld [vmem:[#allocation2 + $0x20] sm:$0xff]  ;;  %v69_v40 = vand.u32 127, %v68_v37  ;;  %v2179_v56 = vshrl.u32 %v68_v37, 7  ;;  %1584 = vmatprep.mubr.msk.f32.mxu1 %vm2117_vm6, %v2113_v43 }
  0x17   :  { %v1787_v14 = vpack.c.bf16 %v30_v12, %v29_v11  ;;  %v1791_v16 = vpack.c.bf16 %v32_v15, %v31_v13  ;;  %v101_v17 = vadd.s32 12, %v99_v9  ;;  %v34_v20 = vld [vmem:[#allocation2 + $0x28] sm:$0xff]  ;;  %v35_v22 = vld [vmem:[#allocation2 + $0x30] sm:$0xff]  ;;  %v36_v23 = vld [vmem:[#allocation2 + $0x38] sm:$0xff]  ;;  %v2116_v11 = vmov 0.0|0.0   ;;  %s2118_s13 = smov 32  }
  0x18   :  { %v100_v18 = vadd.s32 12, %v98_v10  ;;  %v1795_v21 = vpack.c.bf16 %v34_v20, %v33_v19  ;;  %v1799_v24 = vpack.c.bf16 %v36_v23, %v35_v22  ;;  %v37_v25 = vld [vmem:[#allocation2 + $0x40] sm:$0xff]  ;;  %v38_v26 = vld [vmem:[#allocation2 + $0x48] sm:$0xff]  ;;  %v39_v28 = vld [vmem:[#allocation2 + $0x50] sm:$0xff]  ;;  %v118_v57 = vsub.s32 0, %v2179_v56  ;;  %1819 = vmatprep.subr.bf16.mxu1 %v2116_v11  ;;  %s2119_s16 = smov [#allocation5]  }
  0x19   :  { %88 = vperm.xlu1 %1983, %v83_v4   ;;  %85 = vperm.xlu0 %1982, %v82_v8   ;;  %v1803_v27 = vpack.c.bf16 %v38_v26, %v37_v25  ;;  %v40_v29 = vld [vmem:[#allocation2 + $0x58] sm:$0xff]  ;;  %v41_v31 = vld [vmem:[#allocation2 + $0x60] sm:$0xff]  ;;  %v42_v32 = vld [vmem:[#allocation2 + $0x68] sm:$0xff]  ;;  %vm217_vm7 = vcmask 1041408   ;;  %vm224_vm8 = vcmask 261120   ;;  %vm234_vm9 = vcmask 523264  }
  0x1a   :  { %1788 = vmatprep.subr.bf16.mxu0 %v1787_v14  ;;  %v1807_v30 = vpack.c.bf16 %v40_v29, %v39_v28  ;;  %v1811_v33 = vpack.c.bf16 %v42_v32, %v41_v31  ;;  %v43_v34 = vld [vmem:[#allocation2 + $0x70] sm:$0xff]  ;;  %v44_v35 = vld [vmem:[#allocation2 + $0x78] sm:$0xff]  ;;  %v2185_v58 = vld [vmem:[%s2532_s2] sm:$0xff]  ;;  %vm244_vm10 = vcmask 785408   ;;  %vm1182_vm11 = vcmask 1043456   ;;  %s1360_s17 = sshll.u32 %s2119_s16, 4  ;;  %s1361_s17 = int_to_ptr.vmem [resolvable:$true] %s1360_s17 }
  0x1b   :  { %1790 = vmatpush3.bf16.msra.mxu0 %v1787_v14  ;;  %v1815_v36 = vpack.c.bf16 %v44_v35, %v43_v34  ;;  %v119_v59 = vrot.slane %v2185_v58, %v118_v57  ;;  %v45_v8 = vld [vmem:[#allocation2 + $0x80] sm:$0xff]  ;;  %v46_v9 = vld [vmem:[#allocation2 + $0x88] sm:$0xff]  ;;  %v47_v10 = vld [vmem:[#allocation2 + $0x90] sm:$0xff]  ;;  %vm1184_vm12 = vcmask 1045504   ;;  %s2083_s18 = scalar_lea.vmem %s1361_s17, 384  ;;  %p2088_p9 = scmp.lt.s32.totalorder %s1361_s17, %s1361_s17 }
  0x1c   :  { %1792 = vmatprep.subr.bf16.mxu0 %v1791_v16  ;;  %v2197_v12 = vpack.c.bf16 %v46_v9, %v45_v8  ;;  %v48_v13 = vld [vmem:[#allocation2 + $0x98] sm:$0xff]  ;;  %v49_v15 = vld [vmem:[#allocation2 + $0xa0] sm:$0xff]  ;;  %v54_v22 = vld [vmem:[#allocation2 + $0xc8] sm:$0xff]  ;;  %p2084_p8 = scmp.ne.s32.totalorder %s1361_s17, %s2083_s18  ;;  %p2089_p10 = scmp.lt.s32.totalorder %s2083_s18, %s2083_s18 }
  0x1d   :  { %106 = vperm.xlu1 %1983, %v101_v17   ;;  %103 = vperm.xlu0 %1982, %v100_v18   ;;  %v2201_v14 = vpack.c.bf16 %v48_v13, %v47_v10  ;;  %v51_v18 = vld [vmem:[#allocation2 + $0xb0] sm:$0xff]  ;;  %v52_v19 = vld [vmem:[#allocation2 + $0xb8] sm:$0xff] }
  0x1e   :  { %1821 = vmatpush3.bf16.msra.mxu1 %v2197_v12  ;;  %v2213_v20 = vpack.c.bf16 %v52_v19, %v51_v18  ;;  %v56_v25 = vld [vmem:[#allocation2 + $0xd8] sm:$0xff]  ;;  %p2090_p11 = por %p2089_p10, %p2088_p9 }
  0x1f   :  { %1794 = vmatpush3.bf16.msra.mxu0 %v1791_v16  ;;  %1822 = vmatprep.subr.bf16.mxu1 %v2116_v11  ;;  %v50_v16 = vld [vmem:[#allocation2 + $0xa8] sm:$0xff] }
  0x20   :  { %1796 = vmatprep.subr.bf16.mxu0 %v1795_v21  ;;  %v2207_v17 = vpack.c.bf16 %v50_v16, %v49_v15  ;;  %p2091_p12 = pnand %p2090_p11, %p2084_p8 }
  0x22   :  { %1824 = vmatpush3.bf16.msra.mxu1 %v2201_v14 }
  0x23   :  { %1798 = vmatpush3.bf16.msra.mxu0 %v1795_v21  ;;  %1825 = vmatprep.subr.bf16.mxu1 %v2116_v11  ;;  %v53_v21 = vld [vmem:[#allocation2 + $0xc0] sm:$0xff] }
  0x24   :  { %1800 = vmatprep.subr.bf16.mxu0 %v1799_v24  ;;  %v2222_v23 = vpack.c.bf16 %v54_v22, %v53_v21 }
  0x26   :  { %1827 = vmatpush3.bf16.msra.mxu1 %v2207_v17 }
  0x27   :  { %1802 = vmatpush3.bf16.msra.mxu0 %v1799_v24  ;;  %1828 = vmatprep.subr.bf16.mxu1 %v2116_v11  ;;  %v55_v24 = vld [vmem:[#allocation2 + $0xd0] sm:$0xff] }
  0x28   :  { %1804 = vmatprep.subr.bf16.mxu0 %v1803_v27  ;;  %v2228_v26 = vpack.c.bf16 %v56_v25, %v55_v24 }
  0x2a   :  { %1830 = vmatpush3.bf16.msra.mxu1 %v2213_v20 }
  0x2b   :  { %1806 = vmatpush3.bf16.msra.mxu0 %v1803_v27  ;;  %1831 = vmatprep.subr.bf16.mxu1 %v2116_v11 }
  0x2c   :  { %1808 = vmatprep.subr.bf16.mxu0 %v1807_v30 }
  0x2e   :  { %1833 = vmatpush3.bf16.msra.mxu1 %v2222_v23 }
  0x2f   :  { %1810 = vmatpush3.bf16.msra.mxu0 %v1807_v30  ;;  %1834 = vmatprep.subr.bf16.mxu1 %v2116_v11 }
  0x30   :  { %1812 = vmatprep.subr.bf16.mxu0 %v1811_v33 }
  0x32   :  { %1836 = vmatpush3.bf16.msra.mxu1 %v2228_v26 }
  0x33   :  { %1814 = vmatpush3.bf16.msra.mxu0 %v1811_v33  ;;  %1837 = vmatprep.subr.bf16.mxu1 %v2116_v11 }
  0x34   :  { %1816 = vmatprep.subr.bf16.mxu0 %v1815_v36 }
  0x37   :  { %1818 = vmatpush3.bf16.msra.mxu0 %v1815_v36 }
  0x38   :  { %1855 = vmatprep.subr.bf16.mxu0 %v2116_v11 }
  0x94   :  { %v75_v38 = vpop.permute.xlu1 %74  ;;  %v72_v39 = vpop.permute.xlu0 %71 }
  0x95   :  { %vm77_vm0 = vcmp.eq.s32.totalorder %v69_v40, %v75_v38  ;;  %vm76_vm1 = vcmp.eq.s32.totalorder %v69_v40, %v72_v39 }
  0x96   :  { %v1373_v46 = vsel %vm77_vm0, 1.0, %v2113_v43  ;;  %v1372_v47 = vsel %vm76_vm1, 1.0, %v2113_v43 }
  0x98   :  { %v89_v41 = vpop.permute.xlu1 %88  ;;  %v86_v42 = vpop.permute.xlu0 %85 }
  0x99   :  { %vm91_vm2 = vcmp.eq.s32.totalorder %v69_v40, %v89_v41  ;;  %vm90_vm3 = vcmp.eq.s32.totalorder %v69_v40, %v86_v42 }
  0x9a   :  { %v1375_v44 = vsel %vm91_vm2, 1.0, %v2113_v43  ;;  %v1374_v45 = vsel %vm90_vm3, 1.0, %v2113_v43 }
  0x9b   :  { %v97_v50 = vadd.f32 %v1375_v44, %v1373_v46  ;;  %v96_v51 = vadd.f32 %v1374_v45, %v1372_v47 }
  0x9c   :  { %v107_v48 = vpop.permute.xlu1 %106  ;;  %v104_v49 = vpop.permute.xlu0 %103 }
  0x9d   :  { %vm109_vm4 = vcmp.eq.s32.totalorder %v69_v40, %v107_v48  ;;  %vm108_vm5 = vcmp.eq.s32.totalorder %v69_v40, %v104_v49  ;;  %v197_v40 = vsub.s32 1, %v2179_v56 }
  0x9e   :  { %v1377_v52 = vsel %vm109_vm4, 1.0, %v2113_v43  ;;  %v1376_v53 = vsel %vm108_vm5, 1.0, %v2113_v43 }
  0x9f   :  { %v115_v54 = vadd.f32 %v1377_v52, %v97_v50  ;;  %v114_v55 = vadd.f32 %v1376_v53, %v96_v51  ;;  %v2266_v42 = vrot.slane %v2185_v58, %v197_v40 }
  0xa1   :  { %1557 = vmatprep.mubr.f32.mxu0 %v114_v55 }
  0xa2   :  { %1558 = vmatmul.mubr.f32.vlgmr.msra.gmra.mrb[0].mxu0 %v115_v54 }
  0xa3   :  { %1857 = vmatpush3.bf16.msra.mxu0 %v2197_v12  ;;  %1638 = vmatprep.mubr.msk.f32.mxu0 %vm2117_vm6, %v2113_v43 }
  0xa4   :  { %1858 = vmatprep.subr.bf16.mxu0 %v2116_v11 }
  0xa7   :  { %1860 = vmatpush3.bf16.msra.mxu0 %v2201_v14 }
  0xa8   :  { %1861 = vmatprep.subr.bf16.mxu0 %v2116_v11 }
  0xab   :  { %1863 = vmatpush3.bf16.msra.mxu0 %v2207_v17 }
  0xac   :  { %1864 = vmatprep.subr.bf16.mxu0 %v2116_v11 }
  0xaf   :  { %1866 = vmatpush3.bf16.msra.mxu0 %v2213_v20 }
  0xb0   :  { %1867 = vmatprep.subr.bf16.mxu0 %v2116_v11 }
  0xb3   :  { %1869 = vmatpush3.bf16.msra.mxu0 %v2222_v23 }
  0xb4   :  { %1870 = vmatprep.subr.bf16.mxu0 %v2116_v11 }
  0xb7   :  { %1872 = vmatpush3.bf16.msra.mxu0 %v2228_v26 }
  0xb8   :  { %1891 = vmatprep.subr.bf16.mxu0 %v2116_v11 }
 0x175   :  { %v1559_v60 = vpop.f32.mrb[0].mxu0 }
 0x176   :  { %v2188_v61 = vadd.f32 %v1559_v60, %v119_v59  ;;  %v186_v62 = vpop.f32.mrb[1].mxu0 }
 0x177   :  { %v2190_v63 = vadd.f32 %v186_v62, %v119_v59 }
 0x179   :  { %1984 = vtanh.f32 %v2190_v63  ;;  %v1378_v1 = vmul.f32 -1.442695, %v2190_v63  ;;  %v241_v41 = vrot.slane %v2190_v63, 2  ;;  %v364_v13 = vrot.slane %v2190_v63, 4 }
 0x17b   :  { %1986 = vpow2.f32 %v1378_v1  ;;  %v243_v44 = vsel %vm217_vm7, %v241_v41, %v2266_v42  ;;  %v366_v15 = vsel %vm217_vm7, %v364_v13, %v2266_v42 }
 0x183   :  { %v1985_v0 = vpop.eup %1984 }
 0x184   :  { %207 = vrot.lane.b32.xlu0 %v1985_v0, %s2114_s11 }
 0x185   :  { %v1987_v2 = vpop.eup %1986 }
 0x186   :  { %v202_v3 = vadd.f32 1.0, %v1987_v2 }
 0x188   :  { %1988 = vrcp.f32 %v202_v3 }
 0x192   :  { %v1989_v4 = vpop.eup %1988 }
 0x1f6   :  { %v208_v5 = vpop.permute.xlu0 %207 }
 0x1f7   :  { %v210_v6 = vmul.f32 %v1989_v4, %v208_v5 }
 0x1f9   :  { %1990 = vtanh.f32 %v210_v6  ;;  %v219_v31 = vsel %vm217_vm7, %v210_v6, 0.0 }
 0x203   :  { %v1991_v7 = vpop.eup %1990 }
 0x204   :  { %213 = vrot.lane.b32.xlu1 %v1991_v7, %s2115_s12 }
 0x276   :  { %v214_v27 = vpop.permute.xlu1 %213 }
 0x277   :  { %v216_v28 = vmul.f32 %v1989_v4, %v214_v27 }
 0x279   :  { %v218_v29 = vsel %vm217_vm7, %v216_v28, 0.0 }
 0x27a   :  { %230 = vrot.lane.b32.xlu1 %v218_v29, %s2115_s12  ;;  %v226_v30 = vrot.slane %v218_v29, 2 }
 0x27c   :  { %227 = vrot.lane.b32.xlu0 %v226_v30, %s2114_s11 }
 0x280   :  { %221 = vrot.lane.b32.xlu0 %v218_v29, %s2118_s13 }
 0x284   :  { %326 = vrot.lane.b32.xlu0 %v219_v31, %s2118_s13 }
 0x2ec   :  { %v231_v33 = vpop.permute.xlu1 %230 }
 0x2ee   :  { %v228_v32 = vpop.permute.xlu0 %227 }
 0x2ef   :  { %v233_v34 = vsel %vm224_vm8, 0.0, %v228_v32 }
 0x2f0   :  { %v235_v35 = vsel %vm234_vm9, %v233_v34, %v231_v33 }
 0x2f1   :  { %v237_v36 = vrot.slane %v235_v35, 6 }
 0x2f2   :  { %v222_v37 = vpop.permute.xlu0 %221 }
 0x2f3   :  { %v225_v38 = vsel %vm224_vm8, %v222_v37, 0.0 }
 0x2f4   :  { %v239_v39 = vsel %vm217_vm7, %v225_v38, %v237_v36 }
 0x2f5   :  { %1585 = vmatmul.mubr.msk.f32.vlgmr.msra.gmra.mrb[0].mxu1 %vm244_vm10, %v239_v39 }
 0x2f6   :  { %1839 = vmatpush3.bf16.msra.mxu1 %v2197_v12  ;;  %1611 = vmatprep.mubr.msk.f32.mxu1 %vm2117_vm6, %v2113_v43  ;;  %v327_v55 = vpop.permute.xlu0 %326 }
 0x2f7   :  { %1840 = vmatprep.subr.bf16.mxu1 %v2116_v11 }
 0x2fa   :  { %1842 = vmatpush3.bf16.msra.mxu1 %v2201_v14 }
 0x2fb   :  { %1843 = vmatprep.subr.bf16.mxu1 %v2116_v11 }
 0x2fe   :  { %1845 = vmatpush3.bf16.msra.mxu1 %v2207_v17 }
 0x2ff   :  { %1846 = vmatprep.subr.bf16.mxu1 %v2116_v11 }
 0x302   :  { %1848 = vmatpush3.bf16.msra.mxu1 %v2213_v20 }
 0x303   :  { %1849 = vmatprep.subr.bf16.mxu1 %v2116_v11 }
 0x306   :  { %1851 = vmatpush3.bf16.msra.mxu1 %v2222_v23 }
 0x307   :  { %1852 = vmatprep.subr.bf16.mxu1 %v2116_v11 }
 0x30a   :  { %1854 = vmatpush3.bf16.msra.mxu1 %v2228_v26 }
 0x30b   :  { %1873 = vmatprep.subr.bf16.mxu1 %v2116_v11 }
 0x3c8   :  { %v314_v45 = vpop.f32.mrb[0].mxu1 }
 0x3c9   :  { %v315_v46 = vadd.f32 %v314_v45, %v243_v44  ;;  %v1586_v47 = vpop.f32.mrb[1].mxu1 }
 0x3ca   :  { %v482_v47 = vrot.slane %v2190_v63, 6 }
 0x3cb   :  { %1992 = vtanh.f32 %v315_v46  ;;  %v1380_v49 = vmul.f32 -1.442695, %v315_v46 }
 0x3cd   :  { %1994 = vpow2.f32 %v1380_v49 }
 0x3d5   :  { %v1993_v48 = vpop.eup %1992 }
 0x3d6   :  { %331 = vrot.lane.b32.xlu1 %v1993_v48, %s2114_s11  ;;  %v484_v48 = vsel %vm217_vm7, %v482_v47, %v2266_v42 }
 0x3d7   :  { %v1995_v50 = vpop.eup %1994 }
 0x3d8   :  { %v321_v51 = vadd.f32 1.0, %v1995_v50 }
 0x3da   :  { %1996 = vrcp.f32 %v321_v51 }
 0x3e4   :  { %v1997_v52 = vpop.eup %1996 }
 0x3e5   :  { %v329_v57 = vmul.f32 %v1997_v52, %v327_v55 }
 0x448   :  { %v332_v53 = vpop.permute.xlu1 %331 }
 0x449   :  { %v334_v54 = vmul.f32 %v1997_v52, %v332_v53 }
 0x44b   :  { %336 = vrot.lane.b32.xlu1 %v334_v54, %s2118_s13 }
 0x4bd   :  { %v337_v59 = vpop.permute.xlu1 %336 }
 0x4be   :  { %v339_v60 = vadd.f32 %v337_v59, %v329_v57 }
 0x4c0   :  { %1998 = vtanh.f32 %v339_v60 }
 0x4ca   :  { %v1999_v62 = vpop.eup %1998 }
 0x4cb   :  { %342 = vrot.lane.b32.xlu0 %v1999_v62, %s2114_s11 }
 0x53d   :  { %v343_v0 = vpop.permute.xlu0 %342 }
 0x53e   :  { %v2273_v1 = vmul.f32 %v1997_v52, %v343_v0 }
 0x540   :  { %355 = vrot.lane.b32.xlu0 %v2273_v1, %s2115_s12  ;;  %v351_v2 = vrot.slane %v2273_v1, 2 }
 0x542   :  { %352 = vrot.lane.b32.xlu1 %v351_v2, %s2114_s11 }
 0x546   :  { %347 = vrot.lane.b32.xlu1 %v2273_v1, %s2118_s13 }
 0x5b2   :  { %v356_v4 = vpop.permute.xlu0 %355 }
 0x5b4   :  { %v353_v3 = vpop.permute.xlu1 %352 }
 0x5b5   :  { %v358_v5 = vsel %vm224_vm8, 0.0, %v353_v3 }
 0x5b6   :  { %v359_v6 = vsel %vm234_vm9, %v358_v5, %v356_v4 }
 0x5b7   :  { %v361_v7 = vrot.slane %v359_v6, 6 }
 0x5b8   :  { %v348_v8 = vpop.permute.xlu1 %347 }
 0x5b9   :  { %v350_v9 = vsel %vm224_vm8, %v348_v8, 0.0 }
 0x5ba   :  { %v363_v10 = vsel %vm217_vm7, %v350_v9, %v361_v7 }
 0x5bb   :  { %1612 = vmatmul.mubr.msk.f32.vlgmr.msra.gmra.mrb[2].mxu1 %vm244_vm10, %v363_v10 }
 0x5bc   :  { %1875 = vmatpush3.bf16.msra.mxu1 %v2197_v12  ;;  %1665 = vmatprep.mubr.msk.f32.mxu1 %vm2117_vm6, %v2113_v43 }
 0x5bd   :  { %1876 = vmatprep.subr.bf16.mxu1 %v2116_v11 }
 0x5c0   :  { %1878 = vmatpush3.bf16.msra.mxu1 %v2201_v14 }
 0x5c1   :  { %1879 = vmatprep.subr.bf16.mxu1 %v2116_v11 }
 0x5c4   :  { %1881 = vmatpush3.bf16.msra.mxu1 %v2207_v17 }
 0x5c5   :  { %1882 = vmatprep.subr.bf16.mxu1 %v2116_v11 }
 0x5c8   :  { %1884 = vmatpush3.bf16.msra.mxu1 %v2213_v20 }
 0x5c9   :  { %1885 = vmatprep.subr.bf16.mxu1 %v2116_v11 }
 0x5cc   :  { %1887 = vmatpush3.bf16.msra.mxu1 %v2222_v23 }
 0x5cd   :  { %1888 = vmatprep.subr.bf16.mxu1 %v2116_v11 }
 0x5d0   :  { %1890 = vmatpush3.bf16.msra.mxu1 %v2228_v26 }
 0x5d1   :  { %1909 = vmatprep.subr.bf16.mxu1 %v2116_v11 }
 0x68e   :  { %v436_v16 = vpop.f32.mrb[2].mxu1 }
 0x68f   :  { %v437_v18 = vadd.f32 %v436_v16, %v366_v15  ;;  %v1613_v19 = vpop.f32.mrb[3].mxu1 }
 0x691   :  { %2000 = vtanh.f32 %v437_v18  ;;  %v1382_v22 = vmul.f32 -1.442695, %v437_v18 }
 0x693   :  { %2002 = vpow2.f32 %v1382_v22 }
 0x69b   :  { %v2001_v21 = vpop.eup %2000 }
 0x69c   :  { %449 = vrot.lane.b32.xlu0 %v2001_v21, %s2114_s11 }
 0x69d   :  { %v2003_v24 = vpop.eup %2002 }
 0x69e   :  { %v443_v25 = vadd.f32 1.0, %v2003_v24 }
 0x6a0   :  { %2004 = vrcp.f32 %v443_v25 }
 0x6aa   :  { %v2005_v27 = vpop.eup %2004 }
 0x6ab   :  { %v447_v30 = vmul.f32 %v2005_v27, %v339_v60 }
 0x70e   :  { %v450_v28 = vpop.permute.xlu0 %449 }
 0x70f   :  { %v452_v29 = vmul.f32 %v2005_v27, %v450_v28 }
 0x711   :  { %454 = vrot.lane.b32.xlu1 %v452_v29, %s2118_s13 }
 0x783   :  { %v455_v31 = vpop.permute.xlu1 %454 }
 0x784   :  { %v457_v32 = vadd.f32 %v455_v31, %v447_v30 }
 0x786   :  { %2006 = vtanh.f32 %v457_v32 }
 0x790   :  { %v2007_v33 = vpop.eup %2006 }
 0x791   :  { %460 = vrot.lane.b32.xlu0 %v2007_v33, %s2114_s11 }
 0x803   :  { %v461_v34 = vpop.permute.xlu0 %460 }
 0x804   :  { %v463_v35 = vmul.f32 %v2005_v27, %v461_v34 }
 0x806   :  { %473 = vrot.lane.b32.xlu0 %v463_v35, %s2115_s12  ;;  %v469_v36 = vrot.slane %v463_v35, 2  ;;  %v1181_v8 = vsel %vm217_vm7, %v351_v2, %v463_v35  ;;  %v600_v2 = vsel %vm217_vm7, %v2188_v61, %v2266_v42 }
 0x808   :  { %470 = vrot.lane.b32.xlu1 %v469_v36, %s2114_s11 }
 0x80c   :  { %465 = vrot.lane.b32.xlu1 %v463_v35, %s2118_s13 }
 0x878   :  { %v474_v38 = vpop.permute.xlu0 %473 }
 0x87a   :  { %v471_v37 = vpop.permute.xlu1 %470 }
 0x87b   :  { %v476_v39 = vsel %vm224_vm8, 0.0, %v471_v37 }
 0x87c   :  { %v477_v40 = vsel %vm234_vm9, %v476_v39, %v474_v38 }
 0x87d   :  { %v479_v41 = vrot.slane %v477_v40, 6 }
 0x87e   :  { %v466_v44 = vpop.permute.xlu1 %465 }
 0x87f   :  { %v468_v45 = vsel %vm224_vm8, %v466_v44, 0.0 }
 0x880   :  { %v481_v46 = vsel %vm217_vm7, %v468_v45, %v479_v41 }
 0x881   :  { %1639 = vmatmul.mubr.msk.f32.vlgmr.msra.gmra.mrb[2].mxu0 %vm244_vm10, %v481_v46 }
 0x882   :  { %1893 = vmatpush3.bf16.msra.mxu0 %v2197_v12  ;;  %1692 = vmatprep.mubr.msk.f32.mxu0 %vm2117_vm6, %v2113_v43 }
 0x883   :  { %1894 = vmatprep.subr.bf16.mxu0 %v2116_v11 }
 0x886   :  { %1896 = vmatpush3.bf16.msra.mxu0 %v2201_v14 }
 0x887   :  { %1897 = vmatprep.subr.bf16.mxu0 %v2116_v11 }
 0x88a   :  { %1899 = vmatpush3.bf16.msra.mxu0 %v2207_v17 }
 0x88b   :  { %1900 = vmatprep.subr.bf16.mxu0 %v2116_v11 }
 0x88e   :  { %1902 = vmatpush3.bf16.msra.mxu0 %v2213_v20 }
 0x88f   :  { %1903 = vmatprep.subr.bf16.mxu0 %v2116_v11 }
 0x892   :  { %1905 = vmatpush3.bf16.msra.mxu0 %v2222_v23 }
 0x893   :  { %1906 = vmatprep.subr.bf16.mxu0 %v2116_v11 }
 0x896   :  { %1908 = vmatpush3.bf16.msra.mxu0 %v2228_v26 }
 0x897   :  { %1927 = vmatprep.subr.bf16.mxu0 %v2116_v11 }
 0x954   :  { %v554_v49 = vpop.f32.mrb[2].mxu0 }
 0x955   :  { %v555_v50 = vadd.f32 %v554_v49, %v484_v48  ;;  %v1640_v51 = vpop.f32.mrb[3].mxu0 }
 0x957   :  { %2008 = vtanh.f32 %v555_v50  ;;  %v1384_v53 = vmul.f32 -1.442695, %v555_v50 }
 0x959   :  { %2010 = vpow2.f32 %v1384_v53  ;;  %v717_v53 = vrot.slane %v2188_v61, 2 }
 0x961   :  { %v2009_v52 = vpop.eup %2008 }
 0x962   :  { %567 = vrot.lane.b32.xlu0 %v2009_v52, %s2114_s11 }
 0x963   :  { %v2011_v54 = vpop.eup %2010 }
 0x964   :  { %v561_v55 = vadd.f32 1.0, %v2011_v54  ;;  %v719_v54 = vsel %vm217_vm7, %v717_v53, %v2266_v42 }
 0x966   :  { %2012 = vrcp.f32 %v561_v55 }
 0x970   :  { %v2013_v57 = vpop.eup %2012 }
 0x971   :  { %v565_v63 = vmul.f32 %v2013_v57, %v457_v32 }
 0x9d4   :  { %v568_v59 = vpop.permute.xlu0 %567 }
 0x9d5   :  { %v570_v60 = vmul.f32 %v2013_v57, %v568_v59 }
 0x9d7   :  { %572 = vrot.lane.b32.xlu1 %v570_v60, %s2118_s13 }
 0xa49   :  { %v573_v62 = vpop.permute.xlu1 %572 }
 0xa4a   :  { %v575_v0 = vadd.f32 %v573_v62, %v565_v63 }
 0xa4c   :  { %2014 = vtanh.f32 %v575_v0 }
 0xa56   :  { %v2015_v3 = vpop.eup %2014 }
 0xa57   :  { %578 = vrot.lane.b32.xlu0 %v2015_v3, %s2114_s11 }
 0xac9   :  { %v579_v4 = vpop.permute.xlu0 %578 }
 0xaca   :  { %v581_v5 = vmul.f32 %v2013_v57, %v579_v4 }
 0xacc   :  { %591 = vrot.lane.b32.xlu0 %v581_v5, %s2115_s12  ;;  %v587_v6 = vrot.slane %v581_v5, 2  ;;  %v1172_v7 = vrot.slane %v581_v5, 6 }
 0xace   :  { %588 = vrot.lane.b32.xlu1 %v587_v6, %s2114_s11  ;;  %v1183_v9 = vsel %vm1182_vm11, %v1181_v8, %v1172_v7 }
 0xad2   :  { %583 = vrot.lane.b32.xlu1 %v581_v5, %s2118_s13 }
 0xb3e   :  { %v592_v13 = vpop.permute.xlu0 %591 }
 0xb40   :  { %v589_v10 = vpop.permute.xlu1 %588 }
 0xb41   :  { %v594_v15 = vsel %vm224_vm8, 0.0, %v589_v10 }
 0xb42   :  { %v595_v16 = vsel %vm234_vm9, %v594_v15, %v592_v13 }
 0xb43   :  { %v597_v18 = vrot.slane %v595_v16, 6 }
 0xb44   :  { %v584_v19 = vpop.permute.xlu1 %583 }
 0xb45   :  { %v586_v21 = vsel %vm224_vm8, %v584_v19, 0.0 }
 0xb46   :  { %v599_v1 = vsel %vm217_vm7, %v586_v21, %v597_v18 }
 0xb47   :  { %1666 = vmatmul.mubr.msk.f32.vlgmr.msra.gmra.mrb[4].mxu1 %vm244_vm10, %v599_v1 }
 0xb48   :  { %1911 = vmatpush3.bf16.msra.mxu1 %v2197_v12  ;;  %1719 = vmatprep.mubr.msk.f32.mxu1 %vm2117_vm6, %v2113_v43 }
 0xb49   :  { %1912 = vmatprep.subr.bf16.mxu1 %v2116_v11 }
 0xb4c   :  { %1914 = vmatpush3.bf16.msra.mxu1 %v2201_v14 }
 0xb4d   :  { %1915 = vmatprep.subr.bf16.mxu1 %v2116_v11 }
 0xb50   :  { %1917 = vmatpush3.bf16.msra.mxu1 %v2207_v17 }
 0xb51   :  { %1918 = vmatprep.subr.bf16.mxu1 %v2116_v11 }
 0xb54   :  { %1920 = vmatpush3.bf16.msra.mxu1 %v2213_v20 }
 0xb55   :  { %1921 = vmatprep.subr.bf16.mxu1 %v2116_v11 }
 0xb58   :  { %1923 = vmatpush3.bf16.msra.mxu1 %v2222_v23 }
 0xb59   :  { %1924 = vmatprep.subr.bf16.mxu1 %v2116_v11 }
 0xb5c   :  { %1926 = vmatpush3.bf16.msra.mxu1 %v2228_v26 }
 0xb5d   :  { %1945 = vmatprep.subr.bf16.mxu1 %v2116_v11 }
 0xc1a   :  { %v670_v22 = vpop.f32.mrb[4].mxu1 }
 0xc1b   :  { %v671_v24 = vadd.f32 %v670_v22, %v600_v2  ;;  %v1667_v25 = vpop.f32.mrb[5].mxu1 }
 0xc1d   :  { %2016 = vtanh.f32 %v671_v24  ;;  %v1386_v28 = vmul.f32 -1.442695, %v671_v24 }
 0xc1f   :  { %2018 = vpow2.f32 %v1386_v28 }
 0xc27   :  { %v2017_v27 = vpop.eup %2016 }
 0xc28   :  { %683 = vrot.lane.b32.xlu0 %v2017_v27, %s2114_s11 }
 0xc29   :  { %v2019_v29 = vpop.eup %2018 }
 0xc2a   :  { %v677_v30 = vadd.f32 1.0, %v2019_v29 }
 0xc2c   :  { %2020 = vrcp.f32 %v677_v30 }
 0xc36   :  { %v2021_v31 = vpop.eup %2020 }
 0xc37   :  { %v681_v34 = vmul.f32 %v2021_v31, %v575_v0 }
 0xc9a   :  { %v684_v32 = vpop.permute.xlu0 %683 }
 0xc9b   :  { %v686_v33 = vmul.f32 %v2021_v31, %v684_v32 }
 0xc9d   :  { %688 = vrot.lane.b32.xlu1 %v686_v33, %s2118_s13 }
 0xd0f   :  { %v689_v35 = vpop.permute.xlu1 %688 }
 0xd10   :  { %v691_v36 = vadd.f32 %v689_v35, %v681_v34 }
 0xd12   :  { %2022 = vtanh.f32 %v691_v36 }
 0xd1c   :  { %v2023_v37 = vpop.eup %2022 }
 0xd1d   :  { %694 = vrot.lane.b32.xlu0 %v2023_v37, %s2114_s11 }
 0xd8f   :  { %v695_v38 = vpop.permute.xlu0 %694 }
 0xd90   :  { %v697_v39 = vmul.f32 %v2021_v31, %v695_v38 }
 0xd92   :  { %707 = vrot.lane.b32.xlu0 %v697_v39, %s2115_s12  ;;  %v703_v40 = vrot.slane %v697_v39, 2  ;;  %v1174_v41 = vrot.slane %v697_v39, 4 }
 0xd94   :  { %704 = vrot.lane.b32.xlu1 %v703_v40, %s2114_s11  ;;  %v2371_v44 = vsel %vm1184_vm12, %v1183_v9, %v1174_v41 }
 0xd98   :  { %699 = vrot.lane.b32.xlu1 %v697_v39, %s2118_s13 }
 0xe04   :  { %v708_v46 = vpop.permute.xlu0 %707 }
 0xe06   :  { %v705_v45 = vpop.permute.xlu1 %704 }
 0xe07   :  { %v710_v47 = vsel %vm224_vm8, 0.0, %v705_v45 }
 0xe08   :  { %v711_v48 = vsel %vm234_vm9, %v710_v47, %v708_v46 }
 0xe09   :  { %v713_v49 = vrot.slane %v711_v48, 6  ;;  %v953_v48 = vrot.slane %v2188_v61, 6 }
 0xe0a   :  { %v700_v50 = vpop.permute.xlu1 %699 }
 0xe0b   :  { %v702_v51 = vsel %vm224_vm8, %v700_v50, 0.0 }
 0xe0c   :  { %v715_v52 = vsel %vm217_vm7, %v702_v51, %v713_v49  ;;  %v955_v49 = vsel %vm217_vm7, %v953_v48, %v2266_v42 }
 0xe0d   :  { %1693 = vmatmul.mubr.msk.f32.vlgmr.msra.gmra.mrb[4].mxu0 %vm244_vm10, %v715_v52 }
 0xe0e   :  { %1929 = vmatpush3.bf16.msra.mxu0 %v2197_v12  ;;  %1746 = vmatprep.mubr.msk.f32.mxu0 %vm2117_vm6, %v2113_v43 }
 0xe0f   :  { %1930 = vmatprep.subr.bf16.mxu0 %v2116_v11 }
 0xe12   :  { %1932 = vmatpush3.bf16.msra.mxu0 %v2201_v14 }
 0xe13   :  { %1933 = vmatprep.subr.bf16.mxu0 %v2116_v11 }
 0xe16   :  { %1935 = vmatpush3.bf16.msra.mxu0 %v2207_v17 }
 0xe17   :  { %1936 = vmatprep.subr.bf16.mxu0 %v2116_v11 }
 0xe1a   :  { %1938 = vmatpush3.bf16.msra.mxu0 %v2213_v20 }
 0xe1b   :  { %1939 = vmatprep.subr.bf16.mxu0 %v2116_v11 }
 0xe1e   :  { %1941 = vmatpush3.bf16.msra.mxu0 %v2222_v23 }
 0xe1f   :  { %1942 = vmatprep.subr.bf16.mxu0 %v2116_v11 }
 0xe22   :  { %1944 = vmatpush3.bf16.msra.mxu0 %v2228_v26 }
 0xee0   :  { %v789_v55 = vpop.f32.mrb[4].mxu0 }
 0xee1   :  { %v790_v57 = vadd.f32 %v789_v55, %v719_v54  ;;  %v1694_v59 = vpop.f32.mrb[5].mxu0 }
 0xee3   :  { %2024 = vtanh.f32 %v790_v57  ;;  %v1388_v63 = vmul.f32 -1.442695, %v790_v57 }
 0xee5   :  { %2026 = vpow2.f32 %v1388_v63 }
 0xeed   :  { %v2025_v60 = vpop.eup %2024 }
 0xeee   :  { %802 = vrot.lane.b32.xlu0 %v2025_v60, %s2114_s11 }
 0xeef   :  { %v2027_v62 = vpop.eup %2026 }
 0xef0   :  { %v796_v0 = vadd.f32 1.0, %v2027_v62 }
 0xef2   :  { %2028 = vrcp.f32 %v796_v0 }
 0xefc   :  { %v2029_v3 = vpop.eup %2028 }
 0xefd   :  { %v800_v6 = vmul.f32 %v2029_v3, %v691_v36 }
 0xf60   :  { %v803_v4 = vpop.permute.xlu0 %802 }
 0xf61   :  { %v805_v5 = vmul.f32 %v2029_v3, %v803_v4 }
 0xf63   :  { %807 = vrot.lane.b32.xlu1 %v805_v5, %s2118_s13 }
 0xfd5   :  { %v808_v7 = vpop.permute.xlu1 %807 }
 0xfd6   :  { %v810_v8 = vadd.f32 %v808_v7, %v800_v6 }
 0xfd8   :  { %2030 = vtanh.f32 %v810_v8 }
 0xfe2   :  { %v2031_v9 = vpop.eup %2030 }
 0xfe3   :  { %813 = vrot.lane.b32.xlu0 %v2031_v9, %s2114_s11 }
0x1055   :  { %v814_v10 = vpop.permute.xlu0 %813 }
0x1056   :  { %v2398_v13 = vmul.f32 %v2029_v3, %v814_v10 }
0x1058   :  { %826 = vrot.lane.b32.xlu0 %v2398_v13, %s2115_s12  ;;  %v822_v15 = vrot.slane %v2398_v13, 2 }
0x105a   :  { %823 = vrot.lane.b32.xlu1 %v822_v15, %s2114_s11 }
0x105e   :  { %818 = vrot.lane.b32.xlu1 %v2398_v13, %s2118_s13 }
0x10ca   :  { %v827_v18 = vpop.permute.xlu0 %826 }
0x10cc   :  { %v824_v16 = vpop.permute.xlu1 %823 }
0x10cd   :  { %v829_v19 = vsel %vm224_vm8, 0.0, %v824_v16 }
0x10ce   :  { %v830_v21 = vsel %vm234_vm9, %v829_v19, %v827_v18 }
0x10cf   :  { %v832_v1 = vrot.slane %v830_v21, 6 }
0x10d0   :  { %v819_v2 = vpop.permute.xlu1 %818 }
0x10d1   :  { %v821_v22 = vsel %vm224_vm8, %v819_v2, 0.0 }
0x10d2   :  { %v834_v24 = vsel %vm217_vm7, %v821_v22, %v832_v1 }
0x10d3   :  { %1720 = vmatmul.mubr.msk.f32.vlgmr.msra.gmra.mrb[6].mxu1 %vm244_vm10, %v834_v24 }
0x10d4   :  { %1947 = vmatpush3.bf16.msra.mxu1 %v2197_v12  ;;  %1773 = vmatprep.mubr.msk.f32.mxu1 %vm2117_vm6, %v2113_v43  ;;  %v835_v43 = vrot.slane %v2188_v61, 4 }
0x10d5   :  { %1948 = vmatprep.subr.bf16.mxu1 %v2116_v11 }
0x10d6   :  { %v837_v12 = vsel %vm217_vm7, %v835_v43, %v2266_v42 }
0x10d8   :  { %1950 = vmatpush3.bf16.msra.mxu1 %v2201_v14 }
0x10d9   :  { %1951 = vmatprep.subr.bf16.mxu1 %v2116_v11 }
0x10dc   :  { %1953 = vmatpush3.bf16.msra.mxu1 %v2207_v17 }
0x10dd   :  { %1954 = vmatprep.subr.bf16.mxu1 %v2116_v11 }
0x10e0   :  { %1956 = vmatpush3.bf16.msra.mxu1 %v2213_v20 }
0x10e1   :  { %1957 = vmatprep.subr.bf16.mxu1 %v2116_v11 }
0x10e4   :  { %1959 = vmatpush3.bf16.msra.mxu1 %v2222_v23 }
0x10e5   :  { %1960 = vmatprep.subr.bf16.mxu1 %v2116_v11 }
0x10e8   :  { %1962 = vmatpush3.bf16.msra.mxu1 %v2228_v26 }
0x11a6   :  { %v907_v14 = vpop.f32.mrb[6].mxu1 }
0x11a7   :  { %v908_v25 = vadd.f32 %v907_v14, %v837_v12  ;;  %v1721_v17 = vpop.f32.mrb[7].mxu1 }
0x11a9   :  { %2032 = vtanh.f32 %v908_v25  ;;  %v1390_v20 = vmul.f32 -1.442695, %v908_v25 }
0x11ab   :  { %2034 = vpow2.f32 %v1390_v20 }
0x11b3   :  { %v2033_v27 = vpop.eup %2032 }
0x11b4   :  { %920 = vrot.lane.b32.xlu0 %v2033_v27, %s2114_s11 }
0x11b5   :  { %v2035_v28 = vpop.eup %2034 }
0x11b6   :  { %v914_v23 = vadd.f32 1.0, %v2035_v28 }
0x11b8   :  { %2036 = vrcp.f32 %v914_v23 }
0x11c2   :  { %v2037_v11 = vpop.eup %2036 }
0x11c3   :  { %v918_v30 = vmul.f32 %v2037_v11, %v810_v8 }
0x1226   :  { %v921_v29 = vpop.permute.xlu0 %920 }
0x1227   :  { %v923_v26 = vmul.f32 %v2037_v11, %v921_v29 }
0x1229   :  { %925 = vrot.lane.b32.xlu1 %v923_v26, %s2118_s13 }
0x129b   :  { %v926_v31 = vpop.permute.xlu1 %925 }
0x129c   :  { %v928_v32 = vadd.f32 %v926_v31, %v918_v30 }
0x129e   :  { %2038 = vtanh.f32 %v928_v32 }
0x12a8   :  { %v2039_v33 = vpop.eup %2038 }
0x12a9   :  { %931 = vrot.lane.b32.xlu0 %v2039_v33, %s2114_s11 }
0x131b   :  { %v932_v34 = vpop.permute.xlu0 %931 }
0x131c   :  { %v2432_v35 = vmul.f32 %v2037_v11, %v932_v34 }
0x131e   :  { %944 = vrot.lane.b32.xlu0 %v2432_v35, %s2115_s12  ;;  %v940_v36 = vrot.slane %v2432_v35, 2  ;;  %v1186_v30 = vsel %vm217_vm7, %v822_v15, %v2432_v35 }
0x1320   :  { %941 = vrot.lane.b32.xlu1 %v940_v36, %s2114_s11 }
0x1324   :  { %936 = vrot.lane.b32.xlu1 %v2432_v35, %s2118_s13  ;;  %v1234_v35 = vsub.s32 2, %v2179_v56 }
0x1390   :  { %v945_v38 = vpop.permute.xlu0 %944 }
0x1392   :  { %v942_v37 = vpop.permute.xlu1 %941 }
0x1393   :  { %v947_v39 = vsel %vm224_vm8, 0.0, %v942_v37 }
0x1394   :  { %v948_v40 = vsel %vm234_vm9, %v947_v39, %v945_v38 }
0x1395   :  { %v950_v41 = vrot.slane %v948_v40, 6  ;;  %v1235_v40 = vrot.slane %v2185_v58, %v1234_v35 }
0x1396   :  { %v937_v45 = vpop.permute.xlu1 %936 }
0x1397   :  { %v939_v46 = vsel %vm224_vm8, %v937_v45, 0.0 }
0x1398   :  { %v952_v47 = vsel %vm217_vm7, %v939_v46, %v950_v41 }
0x1399   :  { %1747 = vmatmul.mubr.msk.f32.vlgmr.msra.gmra.mrb[6].mxu0 %vm244_vm10, %v952_v47 }
0x146c   :  { %v1025_v50 = vpop.f32.mrb[6].mxu0 }
0x146d   :  { %v1026_v51 = vadd.f32 %v1025_v50, %v955_v49  ;;  %v1748_v52 = vpop.f32.mrb[7].mxu0  ;;  %v1244_v49 = vsub.s32 3, %v2179_v56 }
0x146f   :  { %2040 = vtanh.f32 %v1026_v51  ;;  %v1392_v54 = vmul.f32 -1.442695, %v1026_v51  ;;  %v1245_v50 = vrot.slane %v2185_v58, %v1244_v49 }
0x1471   :  { %2042 = vpow2.f32 %v1392_v54 }
0x1479   :  { %v2041_v53 = vpop.eup %2040 }
0x147a   :  { %1038 = vrot.lane.b32.xlu0 %v2041_v53, %s2114_s11 }
0x147b   :  { %v2043_v55 = vpop.eup %2042 }
0x147c   :  { %v1032_v57 = vadd.f32 1.0, %v2043_v55 }
0x147e   :  { %2044 = vrcp.f32 %v1032_v57  ;;  %v57_v57 = vld [vmem:[#allocation2 + $0xe0] sm:$0xff] }
0x1488   :  { %v2045_v59 = vpop.eup %2044 }
0x1489   :  { %v1036_v61 = vmul.f32 %v2045_v59, %v928_v32 }
0x14ec   :  { %v1039_v60 = vpop.permute.xlu0 %1038 }
0x14ed   :  { %v1041_v63 = vmul.f32 %v2045_v59, %v1039_v60  ;;  %v59_v60 = vld [vmem:[#allocation2 + $0xf0] sm:$0xff] }
0x14ef   :  { %1043 = vrot.lane.b32.xlu1 %v1041_v63, %s2118_s13 }
0x1561   :  { %v1044_v62 = vpop.permute.xlu1 %1043 }
0x1562   :  { %v2450_v0 = vadd.f32 %v1044_v62, %v1036_v61 }
0x1564   :  { %2046 = vtanh.f32 %v2450_v0 }
0x156e   :  { %v2047_v3 = vpop.eup %2046 }
0x156f   :  { %1049 = vrot.lane.b32.xlu0 %v2047_v3, %s2114_s11  ;;  %v60_v3 = vld [vmem:[#allocation2 + $0xf8] sm:$0xff] }
0x15e1   :  { %v1050_v4 = vpop.permute.xlu0 %1049 }
0x15e2   :  { %v2454_v5 = vmul.f32 %v2045_v59, %v1050_v4  ;;  %v58_v59 = vld [vmem:[#allocation2 + $0xe8] sm:$0xff] }
0x15e3   :  { %v1963_v62 = vpack.c.bf16 %v58_v59, %v57_v57 }
0x15e4   :  { %1058 = vrot.lane.b32.xlu0 %v2454_v5, %s2115_s12  ;;  %v1054_v6 = vrot.slane %v2454_v5, 2  ;;  %v1177_v11 = vrot.slane %v2454_v5, 6 }
0x15e5   :  { %1964 = vmatprep.subr.bf16.mxu0 %v1963_v62 }
0x15e6   :  { %1055 = vrot.lane.b32.xlu1 %v1054_v6, %s2114_s11  ;;  %v1187_v31 = vsel %vm1182_vm11, %v1186_v30, %v1177_v11  ;;  %v1967_v6 = vpack.c.bf16 %v60_v3, %v59_v60  ;;  %1966 = vmatpush3.bf16.msra.mxu0 %v1963_v62 }
0x15e8   :  { %1968 = vmatprep.subr.bf16.mxu0 %v1967_v6 }
0x15ea   :  { %1970 = vmatpush3.bf16.msra.mxu0 %v1967_v6 }
0x1656   :  { %v1059_v8 = vpop.permute.xlu0 %1058 }
0x1658   :  { %v1056_v7 = vpop.permute.xlu1 %1055 }
0x1659   :  { %v1061_v9 = vsel %vm224_vm8, 0.0, %v1056_v7 }
0x165a   :  { %v1062_v10 = vsel %vm234_vm9, %v1061_v9, %v1059_v8 }
0x165b   :  { %1774 = vmatmul.mubr.msk.f32.vlgmr.msra.gmra.mrb[8].mxu1 %vm244_vm10, %v1062_v10 }
0x172e   :  { %v1132_v16 = vpop.f32.mrb[8].mxu1 }
0x172f   :  { %v1133_v18 = vadd.f32 %v1132_v16, %v2266_v42  ;;  %v1775_v19 = vpop.f32.mrb[9].mxu1  ;;  %v1144_v42 = vrot.slane %v2450_v0, 2 }
0x1731   :  { %2048 = vtanh.f32 %v1133_v18  ;;  %v1394_v1 = vmul.f32 -1.442695, %v1133_v18 }
0x1733   :  { %2050 = vpow2.f32 %v1394_v1 }
0x173b   :  { %v2049_v21 = vpop.eup %2048 }
0x173c   :  { %1148 = vrot.lane.b32.xlu1 %v2049_v21, %s2114_s11 }
0x173d   :  { %v2051_v2 = vpop.eup %2050 }
0x173e   :  { %v1139_v22 = vadd.f32 1.0, %v2051_v2 }
0x1740   :  { %2052 = vrcp.f32 %v1139_v22 }
0x174a   :  { %v2053_v24 = vpop.eup %2052 }
0x174b   :  { %v1146_v14 = vmul.f32 %v2053_v24, %v1144_v42 }
0x17ae   :  { %v1149_v43 = vpop.permute.xlu1 %1148 }
0x17af   :  { %v1151_v12 = vmul.f32 %v2053_v24, %v1149_v43 }
0x17b1   :  { %1153 = vrot.lane.b32.xlu0 %v1151_v12, %s2118_s13 }
0x17b5   :  { %1191 = vrot.lane.b32.xlu0 %v2371_v44, %s2118_s13 }
0x1823   :  { %v1154_v25 = vpop.permute.xlu0 %1153 }
0x1824   :  { %v2469_v17 = vadd.f32 %v1154_v25, %v1146_v14 }
0x1826   :  { %2054 = vtanh.f32 %v2469_v17  ;;  %v1168_v7 = vrot.slane %v2469_v17, 6  ;;  %v1254_v17 = vsub.s32 4, %v2179_v56 }
0x1827   :  { %v1192_v27 = vpop.permute.xlu0 %1191 }
0x1828   :  { %v1197_v20 = vsel %vm224_vm8, %v1192_v27, 0.0  ;;  %v1170_v16 = vsel %vm217_vm7, %v2450_v0, %v1168_v7  ;;  %v2060_v27 = vld [vmem:[%s2532_s2] sm:$0xff] }
0x1829   :  { %1198 = vadd.xlane.f32.xlu0 %v1197_v20  ;;  %v1342_v18 = vrot.slane %v1170_v16, 4  ;;  %v1255_v20 = vrot.slane %v2060_v27, %v1254_v17 }
0x1830   :  { %v2055_v28 = vpop.eup %2054 }
0x1831   :  { %1159 = vrot.lane.b32.xlu1 %v2055_v28, %s2114_s11 }
0x18a3   :  { %v1160_v23 = vpop.permute.xlu1 %1159 }
0x18a4   :  { %v2475_v29 = vmul.f32 %v2053_v24, %v1160_v23 }
0x18a6   :  { %v1179_v26 = vrot.slane %v2475_v29, 2  ;;  %v1164_v22 = vrot.slane %v2475_v29, 6 }
0x18a8   :  { %v1188_v32 = vsel %vm1184_vm12, %v1187_v31, %v1179_v26  ;;  %v1166_v0 = vsel %vm217_vm7, %v2454_v5, %v1164_v22 }
0x18a9   :  { %1193 = vrot.lane.b32.xlu1 %v1188_v32, %s2118_s13 }
0x18b6   :  { %v1199_v33 = vpop.xlane.xlu0 %1198 }
0x18b7   :  { %v1204_v34 = vmul.f32 0.03125, %v1199_v33 }
0x18b9   :  { %v1206_v36 = vsub.f32 %v2371_v44, %v1204_v34 }
0x18bb   :  { %v1208_v37 = vmul.f32 %v1206_v36, %v1206_v36 }
0x18bd   :  { %1212 = vrot.lane.b32.xlu0 %v1208_v37, %s2118_s13 }
0x191b   :  { %v1194_v38 = vpop.permute.xlu1 %1193 }
0x191c   :  { %v1200_v39 = vsel %vm224_vm8, %v1194_v38, 0.0 }
0x191d   :  { %1201 = vadd.xlane.f32.xlu1 %v1200_v39 }
0x192f   :  { %v1213_v13 = vpop.permute.xlu0 %1212 }
0x1930   :  { %v1218_v15 = vsel %vm224_vm8, %v1213_v13, 0.0 }
0x1931   :  { %1219 = vadd.xlane.f32.xlu0 %v1218_v15 }
0x1947   :  { %1237 = vrot.lane.b32.xlu0 %v1235_v40, %s2115_s12 }
0x19aa   :  { %v1202_v41 = vpop.xlane.xlu1 %1201 }
0x19ab   :  { %v1205_v45 = vmul.f32 0.03125, %v1202_v41 }
0x19ad   :  { %v1207_v44 = vsub.f32 %v1188_v32, %v1205_v45 }
0x19af   :  { %v1209_v46 = vmul.f32 %v1207_v44, %v1207_v44 }
0x19b1   :  { %1214 = vrot.lane.b32.xlu1 %v1209_v46, %s2118_s13 }
0x19be   :  { %v1220_v51 = vpop.xlane.xlu0 %1219 }
0x19bf   :  { %v1224_v52 = vmul.f32 0.03125, %v1220_v51 }
0x19c1   :  { %v1226_v53 = vadd.f32 1e-05, %v1224_v52 }
0x19c2   :  { %v1238_v63 = vpop.permute.xlu0 %1237 }
0x19c3   :  { %2056 = vrsqrt.f32 %v1226_v53 }
0x19cd   :  { %v2057_v54 = vpop.eup %2056 }
0x19ce   :  { %v1230_v55 = vmul.f32 %v2057_v54, %v1206_v36 }
0x19d0   :  { %v1240_v58 = vmul.f32 %v1238_v63, %v1230_v55 }
0x1a23   :  { %v1215_v47 = vpop.permute.xlu1 %1214 }
0x1a24   :  { %v1221_v48 = vsel %vm224_vm8, %v1215_v47, 0.0 }
0x1a25   :  { %1222 = vadd.xlane.f32.xlu1 %v1221_v48 }
0x1a36   :  { %1247 = vrot.lane.b32.xlu1 %v1245_v50, %s2115_s12 }
0x1ab2   :  { %v1223_v61 = vpop.xlane.xlu1 %1222 }
0x1ab3   :  { %v1225_v4 = vmul.f32 0.03125, %v1223_v61 }
0x1ab5   :  { %v1227_v8 = vadd.f32 1e-05, %v1225_v4 }
0x1ab6   :  { %v1248_v9 = vpop.permute.xlu1 %1247 }
0x1ab7   :  { %2058 = vrsqrt.f32 %v1227_v8  ;;  %v1250_v10 = vadd.f32 %v1248_v9, %v1240_v58 }
0x1ab9   :  { %1258 = vrot.lane.b32.xlu0 %v1250_v10, %s2118_s13 }
0x1abd   :  { %1343 = vrot.lane.b32.xlu0 %v1342_v18, %s2114_s11 }
0x1ac1   :  { %v2059_v19 = vpop.eup %2058 }
0x1ac2   :  { %v1231_v21 = vmul.f32 %v2059_v19, %v1207_v44 }
0x1ac4   :  { %v1241_v1 = vmul.f32 %v1238_v63, %v1231_v21 }
0x1ac6   :  { %v1251_v2 = vadd.f32 %v1248_v9, %v1241_v1 }
0x1ac8   :  { %1260 = vrot.lane.b32.xlu1 %v1251_v2, %s2118_s13 }
0x1b2b   :  { %v1259_v24 = vpop.permute.xlu0 %1258 }
0x1b2c   :  { %1784 = vmatprep.mubr.msk.f32.mxu0 %vm224_vm8, %v1259_v24 }
0x1b2f   :  { %v1344_v43 = vpop.permute.xlu0 %1343 }
0x1b30   :  { %v1346_v12 = vsel %vm1182_vm11, %v1166_v0, %v1344_v43 }
0x1b31   :  { %1348 = vrot.lane.b32.xlu1 %v1346_v12, %s2118_s13 }
0x1b3a   :  { %v1261_v42 = vpop.permute.xlu1 %1260 }
0x1b3b   :  { %1785 = vmatmul.mubr.msk.f32.vlgmr.msra.gmra.mrb[8].mxu0 %vm224_vm8, %v1261_v42 }
0x1ba3   :  { %v1349_v14 = vpop.permute.xlu1 %1348 }
0x1ba4   :  { %v1351_v25 = vsel %vm224_vm8, %v1349_v14, 0.0 }
0x1ba5   :  { %1354 = vst [vmem:[#allocation5 + $0x10] sm:$0xff] %v1351_v25 }
0x1c0e   :  { %v1786_v5 = vpop.f32.mrb[8].mxu0 }
0x1c0f   :  { %v1338_v28 = vadd.f32 %v1786_v5, %v1255_v20  ;;  %v1332_v23 = vpop.f32.mrb[9].mxu0 }
0x1c10   :  { %v1333_v11 = vadd.f32 %v1332_v23, %v1255_v20 }
0x1c11   :  { %1353 = vst [vmem:[#allocation5 + $0x8] sm:$0xff] %v1338_v28 }
0x1c12   :  { %1352 = vst [vmem:[#allocation5] sm:$0xff] %v1333_v11 }
0x1c13   :  { %2094 = shalt.err (!%p2091_p12)
}
0x1c14   :  { %s2095_s2 = scalar_lea.hbm %s2533_s3, 384 }
0x1c15   :  { %p2096_p13 = scmp.ne.s32.totalorder %s2533_s3, %s2095_s2  ;;  %p2099_p0 = scmp.lt.u32.totalorder %s2095_s2, %s2533_s3 }
0x1c17   :  { %p2101_p1 = pnand %p2099_p0, %p2096_p13 }
0x1c19   :  { %2104 = shalt.err (!%p2101_p1)
}
0x1c1a   :  { %1366 = dma.vmem_to_hbm [thread:$0]  %s1361_s17, 384, %s2533_s3, [#allocation4], %s2110_s22, %s2110_s22, %s2111_s23  }
0x1c1b   :  { %2107 = dma.done.wait [#allocation4], 384  }
0x1c1c   :  { %2108 = vsyncadd [#allocation4], 4294966912 }
0x1c1d   :  { %1370 = vsyncpa [#allocation3], 1 }
0x1c1e   :  { %1371 = vsyncpa [#allocation4], 1 }

</bundles_post_ra>
